<compile_context>
chip_gen: v7x
topology: tpu7x:2x2x1
jax: 0.10.0
libtpu: 0.0.40
codegen_flags: <defaults>
</compile_context>

<pallas_src>
import functools

import jax
import jax.numpy as jnp
import numpy as np
from jax.experimental import pallas as pl
from jax.experimental.pallas import tpu as pltpu


KERNEL_SET = (2, 3, 6, 7)
KMAX = max(KERNEL_SET)


def _round_up(x, m):
    return pl.cdiv(x, m) * m


def _make_kernel(dilation, kmax):
    """Returns the fused inception-conv kernel body (closure over static ints)."""

    def kernel(w_ref, b_ref, x_ref, o_ref):
        # w_ref: [C_out, kmax*C_in]  combined (zero-padded) branch weights, resident
        # b_ref: [C_out, 1]          combined bias, resident
        # x_ref: [GN, C_in, L]       GN (batch*node) rows of the input
        # o_ref: [GN, C_out, T]      per-row conv output (T = max_len)
        gn, _, t = o_ref.shape
        w = w_ref[...]                      # hoisted out of the node loop
        b = b_ref[...]
        for g in range(gn):                 # static unroll over nodes in the block
            xg = x_ref[g]                   # [C_in, L]
            # In-VMEM unfold: 7 dilated taps stacked along the contraction dim.
            u = jnp.concatenate(
                [xg[:, j * dilation:j * dilation + t] for j in range(kmax)],
                axis=0)                     # [kmax*C_in, T]
            yg = jnp.dot(w, u, preferred_element_type=jnp.float32) + b
            o_ref[g] = yg.astype(o_ref.dtype)

    return kernel


@functools.partial(jax.jit, static_argnames=("dilation_factor", "block_nodes"))
def dilated_inception_forward(x, weights, biases, *, dilation_factor=2,
                              block_nodes=16):
    """x: [B, C_in, N, L]; weights: tuple of [cout_k, C_in, 1, k]; biases: tuple of [cout_k]."""
    B, C_in, N, L = x.shape
    d = dilation_factor
    max_len = L - d * (KMAX - 1)
    if max_len <= 0:
        raise ValueError("sequence length too short for kernel 7 with this dilation")

    # ---- hoisted constant prep (once in the wrapper, not per grid step) --------
    couts = [w.shape[0] for w in weights]
    C_out = sum(couts)
    K = KMAX * C_in
    w_parts = []
    for w, kern in zip(weights, KERNEL_SET):
        wk = w[:, :, 0, :].astype(x.dtype)                      # [cok, C_in, kern]
        wk = jnp.pad(wk, ((0, 0), (0, 0), (0, KMAX - kern)))    # taps j >= kern are 0
        w_parts.append(jnp.transpose(wk, (0, 2, 1)).reshape(wk.shape[0], K))
    w_all = jnp.concatenate(w_parts, axis=0)                    # [C_out, 7*C_in]
    b_all = jnp.concatenate(biases).astype(x.dtype).reshape(C_out, 1)

    # ---- layout: one row per (batch, node); channels on sublanes, time on lanes
    x_rows = jnp.transpose(x, (0, 2, 1, 3)).reshape(B * N, C_in, L)
    BN = B * N
    GN = min(block_nodes, _round_up(BN, 8))
    BN_pad = _round_up(BN, GN)
    if BN_pad != BN:
        x_rows = jnp.pad(x_rows, ((0, BN_pad - BN), (0, 0), (0, 0)))

    out_rows = pl.pallas_call(
        _make_kernel(d, KMAX),
        out_shape=jax.ShapeDtypeStruct((BN_pad, C_out, max_len), x.dtype),
        grid_spec=pltpu.PrefetchScalarGridSpec(
            num_scalar_prefetch=0,
            grid=(BN_pad // GN,),
            in_specs=[
                pl.BlockSpec((C_out, K), lambda i: (0, 0)),      # weights: resident
                pl.BlockSpec((C_out, 1), lambda i: (0, 0)),      # bias: resident
                pl.BlockSpec((GN, C_in, L), lambda i: (i, 0, 0)),
            ],
            out_specs=pl.BlockSpec((GN, C_out, max_len), lambda i: (i, 0, 0)),
        ),
        compiler_params=pltpu.CompilerParams(
            dimension_semantics=("parallel",),
            vmem_limit_bytes=32 * 1024 * 1024,   # blocks are small; safe on v5e/v6e/v7x
        ),
    )(w_all, b_all, x_rows)

    out = out_rows[:BN].reshape(B, N, C_out, max_len)
    return jnp.transpose(out, (0, 2, 1, 3))          # [B, C_out, N, max_len]


def dilated_inception_reference(x, weights, biases, dilation_factor=2):
    """Pure-JAX reference mirroring the PyTorch forward (per-branch dilated conv)."""
    outs = []
    for w, b in zip(weights, biases):
        y = jax.lax.conv_general_dilated(
            x, w, window_strides=(1, 1), padding="VALID",
            rhs_dilation=(1, dilation_factor),
            dimension_numbers=("NCHW", "OIHW", "NCHW"),
            precision=jax.lax.Precision.HIGHEST)
        outs.append(y + b[None, :, None, None])
    max_len = outs[-1].shape[-1]
    outs = [o[..., :max_len] for o in outs]          # spec keeps the FIRST max_len steps
    return jnp.concatenate(outs, axis=1)


if __name__ == "__main__":
    B, C_in, C_out, N, L = 2, 8, 16, 24, 28
    dilation = 2

    key = jax.random.PRNGKey(0)
    kx, *ks = jax.random.split(key, 1 + 2 * len(KERNEL_SET))
    x = jax.random.normal(kx, (B, C_in, N, L), jnp.float32)

    cout_k = C_out // len(KERNEL_SET)
    weights, biases = [], []
    for idx, kern in enumerate(KERNEL_SET):
        kw, kb = ks[2 * idx], ks[2 * idx + 1]
        weights.append(
            jax.random.normal(kw, (cout_k, C_in, 1, kern), jnp.float32)
            / jnp.sqrt(C_in * kern))
        biases.append(0.1 * jax.random.normal(kb, (cout_k,), jnp.float32))
    weights, biases = tuple(weights), tuple(biases)

    out = dilated_inception_forward(x, weights, biases, dilation_factor=dilation)
    out = jax.block_until_ready(out)

    ref = dilated_inception_reference(x, weights, biases, dilation_factor=dilation)
    max_len = L - dilation * (KMAX - 1)
    assert out.shape == (B, C_out, N, max_len), out.shape
    np.testing.assert_allclose(np.asarray(out), np.asarray(ref), rtol=1e-5, atol=1e-5)
    print("KERNEL_OK")
</pallas_src>

<mosaic_0001>
module attributes {stable_mosaic.version = 11 : i64} {
  func.func @kernel(%arg0: i32, %arg1: memref<16x56xf32, #tpu.memory_space<vmem>>, %arg2: memref<16x1xf32, #tpu.memory_space<vmem>>, %arg3: memref<16x8x28xf32, #tpu.memory_space<vmem>>, %arg4: memref<16x16x16xf32, #tpu.memory_space<vmem>>) attributes {dimension_semantics = [#tpu.dimension_semantics<parallel>], iteration_bounds = array<i64: 3>, scalar_prefetch = 0 : i64, scratch_operands = 0 : i64, tpu.core_type = #tpu.core_type<tc>, window_params = [{pipeline_mode = #tpu.pipeline_mode<synchronous>, transform_indices = @transform_0, window_bounds = array<i64: 16, 56>}, {pipeline_mode = #tpu.pipeline_mode<synchronous>, transform_indices = @transform_1, window_bounds = array<i64: 16, 1>}, {transform_indices = @transform_2, window_bounds = array<i64: 16, 8, 28>}, {transform_indices = @transform_3, window_bounds = array<i64: 16, 16, 16>}]} {
    %c0 = arith.constant 0 : index
    %c0_0 = arith.constant 0 : index
    %0 = vector.load %arg1[%c0, %c0_0] : memref<16x56xf32, #tpu.memory_space<vmem>>, vector<16x56xf32>
    %c0_1 = arith.constant 0 : index
    %c0_2 = arith.constant 0 : index
    %1 = vector.load %arg2[%c0_1, %c0_2] : memref<16x1xf32, #tpu.memory_space<vmem>>, vector<16x1xf32>
    %c0_3 = arith.constant 0 : index
    %c0_4 = arith.constant 0 : index
    %c0_5 = arith.constant 0 : index
    %2 = vector.load %arg3[%c0_3, %c0_4, %c0_5] : memref<16x8x28xf32, #tpu.memory_space<vmem>>, vector<1x8x28xf32>
    %3 = vector.shape_cast %2 : vector<1x8x28xf32> to vector<8x28xf32>
    %4 = vector.extract_strided_slice %3 {offsets = [0, 0], sizes = [8, 16], strides = [1, 1]} : vector<8x28xf32> to vector<8x16xf32>
    %5 = vector.extract_strided_slice %3 {offsets = [0, 2], sizes = [8, 16], strides = [1, 1]} : vector<8x28xf32> to vector<8x16xf32>
    %6 = vector.extract_strided_slice %3 {offsets = [0, 4], sizes = [8, 16], strides = [1, 1]} : vector<8x28xf32> to vector<8x16xf32>
    %7 = vector.extract_strided_slice %3 {offsets = [0, 6], sizes = [8, 16], strides = [1, 1]} : vector<8x28xf32> to vector<8x16xf32>
    %8 = vector.extract_strided_slice %3 {offsets = [0, 8], sizes = [8, 16], strides = [1, 1]} : vector<8x28xf32> to vector<8x16xf32>
    %9 = vector.extract_strided_slice %3 {offsets = [0, 10], sizes = [8, 16], strides = [1, 1]} : vector<8x28xf32> to vector<8x16xf32>
    %10 = vector.extract_strided_slice %3 {offsets = [0, 12], sizes = [8, 16], strides = [1, 1]} : vector<8x28xf32> to vector<8x16xf32>
    %11 = tpu.concatenate %4, %5, %6, %7, %8, %9, %10 in 0 : vector<8x16xf32>, vector<8x16xf32>, vector<8x16xf32>, vector<8x16xf32>, vector<8x16xf32>, vector<8x16xf32>, vector<8x16xf32> -> vector<56x16xf32>
    %cst = arith.constant dense<0.000000e+00> : vector<16x16xf32>
    %12 = tpu.matmul %0, %11, %cst {dimension_numbers = #tpu.dot_dimension_numbers<[1], [0], [0], [1], [0, 0, 1, 1], [], []>} : vector<16x56xf32>, vector<56x16xf32>, vector<16x16xf32> -> vector<16x16xf32>
    %13 = vector.broadcast %1 : vector<16x1xf32> to vector<16x16xf32>
    %14 = arith.addf %12, %13 : vector<16x16xf32>
    %c0_6 = arith.constant 0 : index
    %c0_7 = arith.constant 0 : index
    %c0_8 = arith.constant 0 : index
    %15 = vector.load %arg4[%c0_6, %c0_7, %c0_8] : memref<16x16x16xf32, #tpu.memory_space<vmem>>, vector<1x16x16xf32>
    %16 = vector.shape_cast %15 : vector<1x16x16xf32> to vector<16x16xf32>
    %17 = vector.shape_cast %14 : vector<16x16xf32> to vector<1x16x16xf32>
    tpu.vector_store %arg4[%c0_6, %c0_7, %c0_8], %17 {strides = array<i32>} : memref<16x16x16xf32, #tpu.memory_space<vmem>>, vector<1x16x16xf32>,
    %c1 = arith.constant 1 : index
    %c0_9 = arith.constant 0 : index
    %c0_10 = arith.constant 0 : index
    %18 = vector.load %arg3[%c1, %c0_9, %c0_10] : memref<16x8x28xf32, #tpu.memory_space<vmem>>, vector<1x8x28xf32>
    %19 = vector.shape_cast %18 : vector<1x8x28xf32> to vector<8x28xf32>
    %20 = vector.extract_strided_slice %19 {offsets = [0, 0], sizes = [8, 16], strides = [1, 1]} : vector<8x28xf32> to vector<8x16xf32>
    %21 = vector.extract_strided_slice %19 {offsets = [0, 2], sizes = [8, 16], strides = [1, 1]} : vector<8x28xf32> to vector<8x16xf32>
    %22 = vector.extract_strided_slice %19 {offsets = [0, 4], sizes = [8, 16], strides = [1, 1]} : vector<8x28xf32> to vector<8x16xf32>
    %23 = vector.extract_strided_slice %19 {offsets = [0, 6], sizes = [8, 16], strides = [1, 1]} : vector<8x28xf32> to vector<8x16xf32>
    %24 = vector.extract_strided_slice %19 {offsets = [0, 8], sizes = [8, 16], strides = [1, 1]} : vector<8x28xf32> to vector<8x16xf32>
    %25 = vector.extract_strided_slice %19 {offsets = [0, 10], sizes = [8, 16], strides = [1, 1]} : vector<8x28xf32> to vector<8x16xf32>
    %26 = vector.extract_strided_slice %19 {offsets = [0, 12], sizes = [8, 16], strides = [1, 1]} : vector<8x28xf32> to vector<8x16xf32>
    %27 = tpu.concatenate %20, %21, %22, %23, %24, %25, %26 in 0 : vector<8x16xf32>, vector<8x16xf32>, vector<8x16xf32>, vector<8x16xf32>, vector<8x16xf32>, vector<8x16xf32>, vector<8x16xf32> -> vector<56x16xf32>
    %cst_11 = arith.constant dense<0.000000e+00> : vector<16x16xf32>
    %28 = tpu.matmul %0, %27, %cst_11 {dimension_numbers = #tpu.dot_dimension_numbers<[1], [0], [0], [1], [0, 0, 1, 1], [], []>} : vector<16x56xf32>, vector<56x16xf32>, vector<16x16xf32> -> vector<16x16xf32>
    %29 = vector.broadcast %1 : vector<16x1xf32> to vector<16x16xf32>
    %30 = arith.addf %28, %29 : vector<16x16xf32>
    %c1_12 = arith.constant 1 : index
    %c0_13 = arith.constant 0 : index
    %c0_14 = arith.constant 0 : index
    %31 = vector.load %arg4[%c1_12, %c0_13, %c0_14] : memref<16x16x16xf32, #tpu.memory_space<vmem>>, vector<1x16x16xf32>
    %32 = vector.shape_cast %31 : vector<1x16x16xf32> to vector<16x16xf32>
    %33 = vector.shape_cast %30 : vector<16x16xf32> to vector<1x16x16xf32>
    tpu.vector_store %arg4[%c1_12, %c0_13, %c0_14], %33 {strides = array<i32>} : memref<16x16x16xf32, #tpu.memory_space<vmem>>, vector<1x16x16xf32>,
    %c2 = arith.constant 2 : index
    %c0_15 = arith.constant 0 : index
    %c0_16 = arith.constant 0 : index
    %34 = vector.load %arg3[%c2, %c0_15, %c0_16] : memref<16x8x28xf32, #tpu.memory_space<vmem>>, vector<1x8x28xf32>
    %35 = vector.shape_cast %34 : vector<1x8x28xf32> to vector<8x28xf32>
    %36 = vector.extract_strided_slice %35 {offsets = [0, 0], sizes = [8, 16], strides = [1, 1]} : vector<8x28xf32> to vector<8x16xf32>
    %37 = vector.extract_strided_slice %35 {offsets = [0, 2], sizes = [8, 16], strides = [1, 1]} : vector<8x28xf32> to vector<8x16xf32>
    %38 = vector.extract_strided_slice %35 {offsets = [0, 4], sizes = [8, 16], strides = [1, 1]} : vector<8x28xf32> to vector<8x16xf32>
    %39 = vector.extract_strided_slice %35 {offsets = [0, 6], sizes = [8, 16], strides = [1, 1]} : vector<8x28xf32> to vector<8x16xf32>
    %40 = vector.extract_strided_slice %35 {offsets = [0, 8], sizes = [8, 16], strides = [1, 1]} : vector<8x28xf32> to vector<8x16xf32>
    %41 = vector.extract_strided_slice %35 {offsets = [0, 10], sizes = [8, 16], strides = [1, 1]} : vector<8x28xf32> to vector<8x16xf32>
    %42 = vector.extract_strided_slice %35 {offsets = [0, 12], sizes = [8, 16], strides = [1, 1]} : vector<8x28xf32> to vector<8x16xf32>
    %43 = tpu.concatenate %36, %37, %38, %39, %40, %41, %42 in 0 : vector<8x16xf32>, vector<8x16xf32>, vector<8x16xf32>, vector<8x16xf32>, vector<8x16xf32>, vector<8x16xf32>, vector<8x16xf32> -> vector<56x16xf32>
    %cst_17 = arith.constant dense<0.000000e+00> : vector<16x16xf32>
    %44 = tpu.matmul %0, %43, %cst_17 {dimension_numbers = #tpu.dot_dimension_numbers<[1], [0], [0], [1], [0, 0, 1, 1], [], []>} : vector<16x56xf32>, vector<56x16xf32>, vector<16x16xf32> -> vector<16x16xf32>
    %45 = vector.broadcast %1 : vector<16x1xf32> to vector<16x16xf32>
    %46 = arith.addf %44, %45 : vector<16x16xf32>
    %c2_18 = arith.constant 2 : index
    %c0_19 = arith.constant 0 : index
    %c0_20 = arith.constant 0 : index
    %47 = vector.load %arg4[%c2_18, %c0_19, %c0_20] : memref<16x16x16xf32, #tpu.memory_space<vmem>>, vector<1x16x16xf32>
    %48 = vector.shape_cast %47 : vector<1x16x16xf32> to vector<16x16xf32>
    %49 = vector.shape_cast %46 : vector<16x16xf32> to vector<1x16x16xf32>
    tpu.vector_store %arg4[%c2_18, %c0_19, %c0_20], %49 {strides = array<i32>} : memref<16x16x16xf32, #tpu.memory_space<vmem>>, vector<1x16x16xf32>,
    %c3 = arith.constant 3 : index
    %c0_21 = arith.constant 0 : index
    %c0_22 = arith.constant 0 : index
    %50 = vector.load %arg3[%c3, %c0_21, %c0_22] : memref<16x8x28xf32, #tpu.memory_space<vmem>>, vector<1x8x28xf32>
    %51 = vector.shape_cast %50 : vector<1x8x28xf32> to vector<8x28xf32>
    %52 = vector.extract_strided_slice %51 {offsets = [0, 0], sizes = [8, 16], strides = [1, 1]} : vector<8x28xf32> to vector<8x16xf32>
    %53 = vector.extract_strided_slice %51 {offsets = [0, 2], sizes = [8, 16], strides = [1, 1]} : vector<8x28xf32> to vector<8x16xf32>
    %54 = vector.extract_strided_slice %51 {offsets = [0, 4], sizes = [8, 16], strides = [1, 1]} : vector<8x28xf32> to vector<8x16xf32>
    %55 = vector.extract_strided_slice %51 {offsets = [0, 6], sizes = [8, 16], strides = [1, 1]} : vector<8x28xf32> to vector<8x16xf32>
    %56 = vector.extract_strided_slice %51 {offsets = [0, 8], sizes = [8, 16], strides = [1, 1]} : vector<8x28xf32> to vector<8x16xf32>
    %57 = vector.extract_strided_slice %51 {offsets = [0, 10], sizes = [8, 16], strides = [1, 1]} : vector<8x28xf32> to vector<8x16xf32>
    %58 = vector.extract_strided_slice %51 {offsets = [0, 12], sizes = [8, 16], strides = [1, 1]} : vector<8x28xf32> to vector<8x16xf32>
    %59 = tpu.concatenate %52, %53, %54, %55, %56, %57, %58 in 0 : vector<8x16xf32>, vector<8x16xf32>, vector<8x16xf32>, vector<8x16xf32>, vector<8x16xf32>, vector<8x16xf32>, vector<8x16xf32> -> vector<56x16xf32>
    %cst_23 = arith.constant dense<0.000000e+00> : vector<16x16xf32>
    %60 = tpu.matmul %0, %59, %cst_23 {dimension_numbers = #tpu.dot_dimension_numbers<[1], [0], [0], [1], [0, 0, 1, 1], [], []>} : vector<16x56xf32>, vector<56x16xf32>, vector<16x16xf32> -> vector<16x16xf32>
    %61 = vector.broadcast %1 : vector<16x1xf32> to vector<16x16xf32>
    %62 = arith.addf %60, %61 : vector<16x16xf32>
    %c3_24 = arith.constant 3 : index
    %c0_25 = arith.constant 0 : index
    %c0_26 = arith.constant 0 : index
    %63 = vector.load %arg4[%c3_24, %c0_25, %c0_26] : memref<16x16x16xf32, #tpu.memory_space<vmem>>, vector<1x16x16xf32>
    %64 = vector.shape_cast %63 : vector<1x16x16xf32> to vector<16x16xf32>
    %65 = vector.shape_cast %62 : vector<16x16xf32> to vector<1x16x16xf32>
    tpu.vector_store %arg4[%c3_24, %c0_25, %c0_26], %65 {strides = array<i32>} : memref<16x16x16xf32, #tpu.memory_space<vmem>>, vector<1x16x16xf32>,
    %c4 = arith.constant 4 : index
    %c0_27 = arith.constant 0 : index
    %c0_28 = arith.constant 0 : index
    %66 = vector.load %arg3[%c4, %c0_27, %c0_28] : memref<16x8x28xf32, #tpu.memory_space<vmem>>, vector<1x8x28xf32>
    %67 = vector.shape_cast %66 : vector<1x8x28xf32> to vector<8x28xf32>
    %68 = vector.extract_strided_slice %67 {offsets = [0, 0], sizes = [8, 16], strides = [1, 1]} : vector<8x28xf32> to vector<8x16xf32>
    %69 = vector.extract_strided_slice %67 {offsets = [0, 2], sizes = [8, 16], strides = [1, 1]} : vector<8x28xf32> to vector<8x16xf32>
    %70 = vector.extract_strided_slice %67 {offsets = [0, 4], sizes = [8, 16], strides = [1, 1]} : vector<8x28xf32> to vector<8x16xf32>
    %71 = vector.extract_strided_slice %67 {offsets = [0, 6], sizes = [8, 16], strides = [1, 1]} : vector<8x28xf32> to vector<8x16xf32>
    %72 = vector.extract_strided_slice %67 {offsets = [0, 8], sizes = [8, 16], strides = [1, 1]} : vector<8x28xf32> to vector<8x16xf32>
    %73 = vector.extract_strided_slice %67 {offsets = [0, 10], sizes = [8, 16], strides = [1, 1]} : vector<8x28xf32> to vector<8x16xf32>
    %74 = vector.extract_strided_slice %67 {offsets = [0, 12], sizes = [8, 16], strides = [1, 1]} : vector<8x28xf32> to vector<8x16xf32>
    %75 = tpu.concatenate %68, %69, %70, %71, %72, %73, %74 in 0 : vector<8x16xf32>, vector<8x16xf32>, vector<8x16xf32>, vector<8x16xf32>, vector<8x16xf32>, vector<8x16xf32>, vector<8x16xf32> -> vector<56x16xf32>
    %cst_29 = arith.constant dense<0.000000e+00> : vector<16x16xf32>
    %76 = tpu.matmul %0, %75, %cst_29 {dimension_numbers = #tpu.dot_dimension_numbers<[1], [0], [0], [1], [0, 0, 1, 1], [], []>} : vector<16x56xf32>, vector<56x16xf32>, vector<16x16xf32> -> vector<16x16xf32>
    %77 = vector.broadcast %1 : vector<16x1xf32> to vector<16x16xf32>
    %78 = arith.addf %76, %77 : vector<16x16xf32>
    %c4_30 = arith.constant 4 : index
    %c0_31 = arith.constant 0 : index
    %c0_32 = arith.constant 0 : index
    %79 = vector.load %arg4[%c4_30, %c0_31, %c0_32] : memref<16x16x16xf32, #tpu.memory_space<vmem>>, vector<1x16x16xf32>
    %80 = vector.shape_cast %79 : vector<1x16x16xf32> to vector<16x16xf32>
    %81 = vector.shape_cast %78 : vector<16x16xf32> to vector<1x16x16xf32>
    tpu.vector_store %arg4[%c4_30, %c0_31, %c0_32], %81 {strides = array<i32>} : memref<16x16x16xf32, #tpu.memory_space<vmem>>, vector<1x16x16xf32>,
    %c5 = arith.constant 5 : index
    %c0_33 = arith.constant 0 : index
    %c0_34 = arith.constant 0 : index
    %82 = vector.load %arg3[%c5, %c0_33, %c0_34] : memref<16x8x28xf32, #tpu.memory_space<vmem>>, vector<1x8x28xf32>
    %83 = vector.shape_cast %82 : vector<1x8x28xf32> to vector<8x28xf32>
    %84 = vector.extract_strided_slice %83 {offsets = [0, 0], sizes = [8, 16], strides = [1, 1]} : vector<8x28xf32> to vector<8x16xf32>
    %85 = vector.extract_strided_slice %83 {offsets = [0, 2], sizes = [8, 16], strides = [1, 1]} : vector<8x28xf32> to vector<8x16xf32>
    %86 = vector.extract_strided_slice %83 {offsets = [0, 4], sizes = [8, 16], strides = [1, 1]} : vector<8x28xf32> to vector<8x16xf32>
    %87 = vector.extract_strided_slice %83 {offsets = [0, 6], sizes = [8, 16], strides = [1, 1]} : vector<8x28xf32> to vector<8x16xf32>
    %88 = vector.extract_strided_slice %83 {offsets = [0, 8], sizes = [8, 16], strides = [1, 1]} : vector<8x28xf32> to vector<8x16xf32>
    %89 = vector.extract_strided_slice %83 {offsets = [0, 10], sizes = [8, 16], strides = [1, 1]} : vector<8x28xf32> to vector<8x16xf32>
    %90 = vector.extract_strided_slice %83 {offsets = [0, 12], sizes = [8, 16], strides = [1, 1]} : vector<8x28xf32> to vector<8x16xf32>
    %91 = tpu.concatenate %84, %85, %86, %87, %88, %89, %90 in 0 : vector<8x16xf32>, vector<8x16xf32>, vector<8x16xf32>, vector<8x16xf32>, vector<8x16xf32>, vector<8x16xf32>, vector<8x16xf32> -> vector<56x16xf32>
    %cst_35 = arith.constant dense<0.000000e+00> : vector<16x16xf32>
    %92 = tpu.matmul %0, %91, %cst_35 {dimension_numbers = #tpu.dot_dimension_numbers<[1], [0], [0], [1], [0, 0, 1, 1], [], []>} : vector<16x56xf32>, vector<56x16xf32>, vector<16x16xf32> -> vector<16x16xf32>
    %93 = vector.broadcast %1 : vector<16x1xf32> to vector<16x16xf32>
    %94 = arith.addf %92, %93 : vector<16x16xf32>
    %c5_36 = arith.constant 5 : index
    %c0_37 = arith.constant 0 : index
    %c0_38 = arith.constant 0 : index
    %95 = vector.load %arg4[%c5_36, %c0_37, %c0_38] : memref<16x16x16xf32, #tpu.memory_space<vmem>>, vector<1x16x16xf32>
    %96 = vector.shape_cast %95 : vector<1x16x16xf32> to vector<16x16xf32>
    %97 = vector.shape_cast %94 : vector<16x16xf32> to vector<1x16x16xf32>
    tpu.vector_store %arg4[%c5_36, %c0_37, %c0_38], %97 {strides = array<i32>} : memref<16x16x16xf32, #tpu.memory_space<vmem>>, vector<1x16x16xf32>,
    %c6 = arith.constant 6 : index
    %c0_39 = arith.constant 0 : index
    %c0_40 = arith.constant 0 : index
    %98 = vector.load %arg3[%c6, %c0_39, %c0_40] : memref<16x8x28xf32, #tpu.memory_space<vmem>>, vector<1x8x28xf32>
    %99 = vector.shape_cast %98 : vector<1x8x28xf32> to vector<8x28xf32>
    %100 = vector.extract_strided_slice %99 {offsets = [0, 0], sizes = [8, 16], strides = [1, 1]} : vector<8x28xf32> to vector<8x16xf32>
    %101 = vector.extract_strided_slice %99 {offsets = [0, 2], sizes = [8, 16], strides = [1, 1]} : vector<8x28xf32> to vector<8x16xf32>
    %102 = vector.extract_strided_slice %99 {offsets = [0, 4], sizes = [8, 16], strides = [1, 1]} : vector<8x28xf32> to vector<8x16xf32>
    %103 = vector.extract_strided_slice %99 {offsets = [0, 6], sizes = [8, 16], strides = [1, 1]} : vector<8x28xf32> to vector<8x16xf32>
    %104 = vector.extract_strided_slice %99 {offsets = [0, 8], sizes = [8, 16], strides = [1, 1]} : vector<8x28xf32> to vector<8x16xf32>
    %105 = vector.extract_strided_slice %99 {offsets = [0, 10], sizes = [8, 16], strides = [1, 1]} : vector<8x28xf32> to vector<8x16xf32>
    %106 = vector.extract_strided_slice %99 {offsets = [0, 12], sizes = [8, 16], strides = [1, 1]} : vector<8x28xf32> to vector<8x16xf32>
    %107 = tpu.concatenate %100, %101, %102, %103, %104, %105, %106 in 0 : vector<8x16xf32>, vector<8x16xf32>, vector<8x16xf32>, vector<8x16xf32>, vector<8x16xf32>, vector<8x16xf32>, vector<8x16xf32> -> vector<56x16xf32>
    %cst_41 = arith.constant dense<0.000000e+00> : vector<16x16xf32>
    %108 = tpu.matmul %0, %107, %cst_41 {dimension_numbers = #tpu.dot_dimension_numbers<[1], [0], [0], [1], [0, 0, 1, 1], [], []>} : vector<16x56xf32>, vector<56x16xf32>, vector<16x16xf32> -> vector<16x16xf32>
    %109 = vector.broadcast %1 : vector<16x1xf32> to vector<16x16xf32>
    %110 = arith.addf %108, %109 : vector<16x16xf32>
    %c6_42 = arith.constant 6 : index
    %c0_43 = arith.constant 0 : index
    %c0_44 = arith.constant 0 : index
    %111 = vector.load %arg4[%c6_42, %c0_43, %c0_44] : memref<16x16x16xf32, #tpu.memory_space<vmem>>, vector<1x16x16xf32>
    %112 = vector.shape_cast %111 : vector<1x16x16xf32> to vector<16x16xf32>
    %113 = vector.shape_cast %110 : vector<16x16xf32> to vector<1x16x16xf32>
    tpu.vector_store %arg4[%c6_42, %c0_43, %c0_44], %113 {strides = array<i32>} : memref<16x16x16xf32, #tpu.memory_space<vmem>>, vector<1x16x16xf32>,
    %c7 = arith.constant 7 : index
    %c0_45 = arith.constant 0 : index
    %c0_46 = arith.constant 0 : index
    %114 = vector.load %arg3[%c7, %c0_45, %c0_46] : memref<16x8x28xf32, #tpu.memory_space<vmem>>, vector<1x8x28xf32>
    %115 = vector.shape_cast %114 : vector<1x8x28xf32> to vector<8x28xf32>
    %116 = vector.extract_strided_slice %115 {offsets = [0, 0], sizes = [8, 16], strides = [1, 1]} : vector<8x28xf32> to vector<8x16xf32>
    %117 = vector.extract_strided_slice %115 {offsets = [0, 2], sizes = [8, 16], strides = [1, 1]} : vector<8x28xf32> to vector<8x16xf32>
    %118 = vector.extract_strided_slice %115 {offsets = [0, 4], sizes = [8, 16], strides = [1, 1]} : vector<8x28xf32> to vector<8x16xf32>
    %119 = vector.extract_strided_slice %115 {offsets = [0, 6], sizes = [8, 16], strides = [1, 1]} : vector<8x28xf32> to vector<8x16xf32>
    %120 = vector.extract_strided_slice %115 {offsets = [0, 8], sizes = [8, 16], strides = [1, 1]} : vector<8x28xf32> to vector<8x16xf32>
    %121 = vector.extract_strided_slice %115 {offsets = [0, 10], sizes = [8, 16], strides = [1, 1]} : vector<8x28xf32> to vector<8x16xf32>
    %122 = vector.extract_strided_slice %115 {offsets = [0, 12], sizes = [8, 16], strides = [1, 1]} : vector<8x28xf32> to vector<8x16xf32>
    %123 = tpu.concatenate %116, %117, %118, %119, %120, %121, %122 in 0 : vector<8x16xf32>, vector<8x16xf32>, vector<8x16xf32>, vector<8x16xf32>, vector<8x16xf32>, vector<8x16xf32>, vector<8x16xf32> -> vector<56x16xf32>
    %cst_47 = arith.constant dense<0.000000e+00> : vector<16x16xf32>
    %124 = tpu.matmul %0, %123, %cst_47 {dimension_numbers = #tpu.dot_dimension_numbers<[1], [0], [0], [1], [0, 0, 1, 1], [], []>} : vector<16x56xf32>, vector<56x16xf32>, vector<16x16xf32> -> vector<16x16xf32>
    %125 = vector.broadcast %1 : vector<16x1xf32> to vector<16x16xf32>
    %126 = arith.addf %124, %125 : vector<16x16xf32>
    %c7_48 = arith.constant 7 : index
    %c0_49 = arith.constant 0 : index
    %c0_50 = arith.constant 0 : index
    %127 = vector.load %arg4[%c7_48, %c0_49, %c0_50] : memref<16x16x16xf32, #tpu.memory_space<vmem>>, vector<1x16x16xf32>
    %128 = vector.shape_cast %127 : vector<1x16x16xf32> to vector<16x16xf32>
    %129 = vector.shape_cast %126 : vector<16x16xf32> to vector<1x16x16xf32>
    tpu.vector_store %arg4[%c7_48, %c0_49, %c0_50], %129 {strides = array<i32>} : memref<16x16x16xf32, #tpu.memory_space<vmem>>, vector<1x16x16xf32>,
    %c8 = arith.constant 8 : index
    %c0_51 = arith.constant 0 : index
    %c0_52 = arith.constant 0 : index
    %130 = vector.load %arg3[%c8, %c0_51, %c0_52] : memref<16x8x28xf32, #tpu.memory_space<vmem>>, vector<1x8x28xf32>
    %131 = vector.shape_cast %130 : vector<1x8x28xf32> to vector<8x28xf32>
    %132 = vector.extract_strided_slice %131 {offsets = [0, 0], sizes = [8, 16], strides = [1, 1]} : vector<8x28xf32> to vector<8x16xf32>
    %133 = vector.extract_strided_slice %131 {offsets = [0, 2], sizes = [8, 16], strides = [1, 1]} : vector<8x28xf32> to vector<8x16xf32>
    %134 = vector.extract_strided_slice %131 {offsets = [0, 4], sizes = [8, 16], strides = [1, 1]} : vector<8x28xf32> to vector<8x16xf32>
    %135 = vector.extract_strided_slice %131 {offsets = [0, 6], sizes = [8, 16], strides = [1, 1]} : vector<8x28xf32> to vector<8x16xf32>
    %136 = vector.extract_strided_slice %131 {offsets = [0, 8], sizes = [8, 16], strides = [1, 1]} : vector<8x28xf32> to vector<8x16xf32>
    %137 = vector.extract_strided_slice %131 {offsets = [0, 10], sizes = [8, 16], strides = [1, 1]} : vector<8x28xf32> to vector<8x16xf32>
    %138 = vector.extract_strided_slice %131 {offsets = [0, 12], sizes = [8, 16], strides = [1, 1]} : vector<8x28xf32> to vector<8x16xf32>
    %139 = tpu.concatenate %132, %133, %134, %135, %136, %137, %138 in 0 : vector<8x16xf32>, vector<8x16xf32>, vector<8x16xf32>, vector<8x16xf32>, vector<8x16xf32>, vector<8x16xf32>, vector<8x16xf32> -> vector<56x16xf32>
    %cst_53 = arith.constant dense<0.000000e+00> : vector<16x16xf32>
    %140 = tpu.matmul %0, %139, %cst_53 {dimension_numbers = #tpu.dot_dimension_numbers<[1], [0], [0], [1], [0, 0, 1, 1], [], []>} : vector<16x56xf32>, vector<56x16xf32>, vector<16x16xf32> -> vector<16x16xf32>
    %141 = vector.broadcast %1 : vector<16x1xf32> to vector<16x16xf32>
    %142 = arith.addf %140, %141 : vector<16x16xf32>
    %c8_54 = arith.constant 8 : index
    %c0_55 = arith.constant 0 : index
    %c0_56 = arith.constant 0 : index
    %143 = vector.load %arg4[%c8_54, %c0_55, %c0_56] : memref<16x16x16xf32, #tpu.memory_space<vmem>>, vector<1x16x16xf32>
    %144 = vector.shape_cast %143 : vector<1x16x16xf32> to vector<16x16xf32>
    %145 = vector.shape_cast %142 : vector<16x16xf32> to vector<1x16x16xf32>
    tpu.vector_store %arg4[%c8_54, %c0_55, %c0_56], %145 {strides = array<i32>} : memref<16x16x16xf32, #tpu.memory_space<vmem>>, vector<1x16x16xf32>,
    %c9 = arith.constant 9 : index
    %c0_57 = arith.constant 0 : index
    %c0_58 = arith.constant 0 : index
    %146 = vector.load %arg3[%c9, %c0_57, %c0_58] : memref<16x8x28xf32, #tpu.memory_space<vmem>>, vector<1x8x28xf32>
    %147 = vector.shape_cast %146 : vector<1x8x28xf32> to vector<8x28xf32>
    %148 = vector.extract_strided_slice %147 {offsets = [0, 0], sizes = [8, 16], strides = [1, 1]} : vector<8x28xf32> to vector<8x16xf32>
    %149 = vector.extract_strided_slice %147 {offsets = [0, 2], sizes = [8, 16], strides = [1, 1]} : vector<8x28xf32> to vector<8x16xf32>
    %150 = vector.extract_strided_slice %147 {offsets = [0, 4], sizes = [8, 16], strides = [1, 1]} : vector<8x28xf32> to vector<8x16xf32>
    %151 = vector.extract_strided_slice %147 {offsets = [0, 6], sizes = [8, 16], strides = [1, 1]} : vector<8x28xf32> to vector<8x16xf32>
    %152 = vector.extract_strided_slice %147 {offsets = [0, 8], sizes = [8, 16], strides = [1, 1]} : vector<8x28xf32> to vector<8x16xf32>
    %153 = vector.extract_strided_slice %147 {offsets = [0, 10], sizes = [8, 16], strides = [1, 1]} : vector<8x28xf32> to vector<8x16xf32>
    %154 = vector.extract_strided_slice %147 {offsets = [0, 12], sizes = [8, 16], strides = [1, 1]} : vector<8x28xf32> to vector<8x16xf32>
    %155 = tpu.concatenate %148, %149, %150, %151, %152, %153, %154 in 0 : vector<8x16xf32>, vector<8x16xf32>, vector<8x16xf32>, vector<8x16xf32>, vector<8x16xf32>, vector<8x16xf32>, vector<8x16xf32> -> vector<56x16xf32>
    %cst_59 = arith.constant dense<0.000000e+00> : vector<16x16xf32>
    %156 = tpu.matmul %0, %155, %cst_59 {dimension_numbers = #tpu.dot_dimension_numbers<[1], [0], [0], [1], [0, 0, 1, 1], [], []>} : vector<16x56xf32>, vector<56x16xf32>, vector<16x16xf32> -> vector<16x16xf32>
    %157 = vector.broadcast %1 : vector<16x1xf32> to vector<16x16xf32>
    %158 = arith.addf %156, %157 : vector<16x16xf32>
    %c9_60 = arith.constant 9 : index
    %c0_61 = arith.constant 0 : index
    %c0_62 = arith.constant 0 : index
    %159 = vector.load %arg4[%c9_60, %c0_61, %c0_62] : memref<16x16x16xf32, #tpu.memory_space<vmem>>, vector<1x16x16xf32>
    %160 = vector.shape_cast %159 : vector<1x16x16xf32> to vector<16x16xf32>
    %161 = vector.shape_cast %158 : vector<16x16xf32> to vector<1x16x16xf32>
    tpu.vector_store %arg4[%c9_60, %c0_61, %c0_62], %161 {strides = array<i32>} : memref<16x16x16xf32, #tpu.memory_space<vmem>>, vector<1x16x16xf32>,
    %c10 = arith.constant 10 : index
    %c0_63 = arith.constant 0 : index
    %c0_64 = arith.constant 0 : index
    %162 = vector.load %arg3[%c10, %c0_63, %c0_64] : memref<16x8x28xf32, #tpu.memory_space<vmem>>, vector<1x8x28xf32>
    %163 = vector.shape_cast %162 : vector<1x8x28xf32> to vector<8x28xf32>
    %164 = vector.extract_strided_slice %163 {offsets = [0, 0], sizes = [8, 16], strides = [1, 1]} : vector<8x28xf32> to vector<8x16xf32>
    %165 = vector.extract_strided_slice %163 {offsets = [0, 2], sizes = [8, 16], strides = [1, 1]} : vector<8x28xf32> to vector<8x16xf32>
    %166 = vector.extract_strided_slice %163 {offsets = [0, 4], sizes = [8, 16], strides = [1, 1]} : vector<8x28xf32> to vector<8x16xf32>
    %167 = vector.extract_strided_slice %163 {offsets = [0, 6], sizes = [8, 16], strides = [1, 1]} : vector<8x28xf32> to vector<8x16xf32>
    %168 = vector.extract_strided_slice %163 {offsets = [0, 8], sizes = [8, 16], strides = [1, 1]} : vector<8x28xf32> to vector<8x16xf32>
    %169 = vector.extract_strided_slice %163 {offsets = [0, 10], sizes = [8, 16], strides = [1, 1]} : vector<8x28xf32> to vector<8x16xf32>
    %170 = vector.extract_strided_slice %163 {offsets = [0, 12], sizes = [8, 16], strides = [1, 1]} : vector<8x28xf32> to vector<8x16xf32>
    %171 = tpu.concatenate %164, %165, %166, %167, %168, %169, %170 in 0 : vector<8x16xf32>, vector<8x16xf32>, vector<8x16xf32>, vector<8x16xf32>, vector<8x16xf32>, vector<8x16xf32>, vector<8x16xf32> -> vector<56x16xf32>
    %cst_65 = arith.constant dense<0.000000e+00> : vector<16x16xf32>
    %172 = tpu.matmul %0, %171, %cst_65 {dimension_numbers = #tpu.dot_dimension_numbers<[1], [0], [0], [1], [0, 0, 1, 1], [], []>} : vector<16x56xf32>, vector<56x16xf32>, vector<16x16xf32> -> vector<16x16xf32>
    %173 = vector.broadcast %1 : vector<16x1xf32> to vector<16x16xf32>
    %174 = arith.addf %172, %173 : vector<16x16xf32>
    %c10_66 = arith.constant 10 : index
    %c0_67 = arith.constant 0 : index
    %c0_68 = arith.constant 0 : index
    %175 = vector.load %arg4[%c10_66, %c0_67, %c0_68] : memref<16x16x16xf32, #tpu.memory_space<vmem>>, vector<1x16x16xf32>
    %176 = vector.shape_cast %175 : vector<1x16x16xf32> to vector<16x16xf32>
    %177 = vector.shape_cast %174 : vector<16x16xf32> to vector<1x16x16xf32>
    tpu.vector_store %arg4[%c10_66, %c0_67, %c0_68], %177 {strides = array<i32>} : memref<16x16x16xf32, #tpu.memory_space<vmem>>, vector<1x16x16xf32>,
    %c11 = arith.constant 11 : index
    %c0_69 = arith.constant 0 : index
    %c0_70 = arith.constant 0 : index
    %178 = vector.load %arg3[%c11, %c0_69, %c0_70] : memref<16x8x28xf32, #tpu.memory_space<vmem>>, vector<1x8x28xf32>
    %179 = vector.shape_cast %178 : vector<1x8x28xf32> to vector<8x28xf32>
    %180 = vector.extract_strided_slice %179 {offsets = [0, 0], sizes = [8, 16], strides = [1, 1]} : vector<8x28xf32> to vector<8x16xf32>
    %181 = vector.extract_strided_slice %179 {offsets = [0, 2], sizes = [8, 16], strides = [1, 1]} : vector<8x28xf32> to vector<8x16xf32>
    %182 = vector.extract_strided_slice %179 {offsets = [0, 4], sizes = [8, 16], strides = [1, 1]} : vector<8x28xf32> to vector<8x16xf32>
    %183 = vector.extract_strided_slice %179 {offsets = [0, 6], sizes = [8, 16], strides = [1, 1]} : vector<8x28xf32> to vector<8x16xf32>
    %184 = vector.extract_strided_slice %179 {offsets = [0, 8], sizes = [8, 16], strides = [1, 1]} : vector<8x28xf32> to vector<8x16xf32>
    %185 = vector.extract_strided_slice %179 {offsets = [0, 10], sizes = [8, 16], strides = [1, 1]} : vector<8x28xf32> to vector<8x16xf32>
    %186 = vector.extract_strided_slice %179 {offsets = [0, 12], sizes = [8, 16], strides = [1, 1]} : vector<8x28xf32> to vector<8x16xf32>
    %187 = tpu.concatenate %180, %181, %182, %183, %184, %185, %186 in 0 : vector<8x16xf32>, vector<8x16xf32>, vector<8x16xf32>, vector<8x16xf32>, vector<8x16xf32>, vector<8x16xf32>, vector<8x16xf32> -> vector<56x16xf32>
    %cst_71 = arith.constant dense<0.000000e+00> : vector<16x16xf32>
    %188 = tpu.matmul %0, %187, %cst_71 {dimension_numbers = #tpu.dot_dimension_numbers<[1], [0], [0], [1], [0, 0, 1, 1], [], []>} : vector<16x56xf32>, vector<56x16xf32>, vector<16x16xf32> -> vector<16x16xf32>
    %189 = vector.broadcast %1 : vector<16x1xf32> to vector<16x16xf32>
    %190 = arith.addf %188, %189 : vector<16x16xf32>
    %c11_72 = arith.constant 11 : index
    %c0_73 = arith.constant 0 : index
    %c0_74 = arith.constant 0 : index
    %191 = vector.load %arg4[%c11_72, %c0_73, %c0_74] : memref<16x16x16xf32, #tpu.memory_space<vmem>>, vector<1x16x16xf32>
    %192 = vector.shape_cast %191 : vector<1x16x16xf32> to vector<16x16xf32>
    %193 = vector.shape_cast %190 : vector<16x16xf32> to vector<1x16x16xf32>
    tpu.vector_store %arg4[%c11_72, %c0_73, %c0_74], %193 {strides = array<i32>} : memref<16x16x16xf32, #tpu.memory_space<vmem>>, vector<1x16x16xf32>,
    %c12 = arith.constant 12 : index
    %c0_75 = arith.constant 0 : index
    %c0_76 = arith.constant 0 : index
    %194 = vector.load %arg3[%c12, %c0_75, %c0_76] : memref<16x8x28xf32, #tpu.memory_space<vmem>>, vector<1x8x28xf32>
    %195 = vector.shape_cast %194 : vector<1x8x28xf32> to vector<8x28xf32>
    %196 = vector.extract_strided_slice %195 {offsets = [0, 0], sizes = [8, 16], strides = [1, 1]} : vector<8x28xf32> to vector<8x16xf32>
    %197 = vector.extract_strided_slice %195 {offsets = [0, 2], sizes = [8, 16], strides = [1, 1]} : vector<8x28xf32> to vector<8x16xf32>
    %198 = vector.extract_strided_slice %195 {offsets = [0, 4], sizes = [8, 16], strides = [1, 1]} : vector<8x28xf32> to vector<8x16xf32>
    %199 = vector.extract_strided_slice %195 {offsets = [0, 6], sizes = [8, 16], strides = [1, 1]} : vector<8x28xf32> to vector<8x16xf32>
    %200 = vector.extract_strided_slice %195 {offsets = [0, 8], sizes = [8, 16], strides = [1, 1]} : vector<8x28xf32> to vector<8x16xf32>
    %201 = vector.extract_strided_slice %195 {offsets = [0, 10], sizes = [8, 16], strides = [1, 1]} : vector<8x28xf32> to vector<8x16xf32>
    %202 = vector.extract_strided_slice %195 {offsets = [0, 12], sizes = [8, 16], strides = [1, 1]} : vector<8x28xf32> to vector<8x16xf32>
    %203 = tpu.concatenate %196, %197, %198, %199, %200, %201, %202 in 0 : vector<8x16xf32>, vector<8x16xf32>, vector<8x16xf32>, vector<8x16xf32>, vector<8x16xf32>, vector<8x16xf32>, vector<8x16xf32> -> vector<56x16xf32>
    %cst_77 = arith.constant dense<0.000000e+00> : vector<16x16xf32>
    %204 = tpu.matmul %0, %203, %cst_77 {dimension_numbers = #tpu.dot_dimension_numbers<[1], [0], [0], [1], [0, 0, 1, 1], [], []>} : vector<16x56xf32>, vector<56x16xf32>, vector<16x16xf32> -> vector<16x16xf32>
    %205 = vector.broadcast %1 : vector<16x1xf32> to vector<16x16xf32>
    %206 = arith.addf %204, %205 : vector<16x16xf32>
    %c12_78 = arith.constant 12 : index
    %c0_79 = arith.constant 0 : index
    %c0_80 = arith.constant 0 : index
    %207 = vector.load %arg4[%c12_78, %c0_79, %c0_80] : memref<16x16x16xf32, #tpu.memory_space<vmem>>, vector<1x16x16xf32>
    %208 = vector.shape_cast %207 : vector<1x16x16xf32> to vector<16x16xf32>
    %209 = vector.shape_cast %206 : vector<16x16xf32> to vector<1x16x16xf32>
    tpu.vector_store %arg4[%c12_78, %c0_79, %c0_80], %209 {strides = array<i32>} : memref<16x16x16xf32, #tpu.memory_space<vmem>>, vector<1x16x16xf32>,
    %c13 = arith.constant 13 : index
    %c0_81 = arith.constant 0 : index
    %c0_82 = arith.constant 0 : index
    %210 = vector.load %arg3[%c13, %c0_81, %c0_82] : memref<16x8x28xf32, #tpu.memory_space<vmem>>, vector<1x8x28xf32>
    %211 = vector.shape_cast %210 : vector<1x8x28xf32> to vector<8x28xf32>
    %212 = vector.extract_strided_slice %211 {offsets = [0, 0], sizes = [8, 16], strides = [1, 1]} : vector<8x28xf32> to vector<8x16xf32>
    %213 = vector.extract_strided_slice %211 {offsets = [0, 2], sizes = [8, 16], strides = [1, 1]} : vector<8x28xf32> to vector<8x16xf32>
    %214 = vector.extract_strided_slice %211 {offsets = [0, 4], sizes = [8, 16], strides = [1, 1]} : vector<8x28xf32> to vector<8x16xf32>
    %215 = vector.extract_strided_slice %211 {offsets = [0, 6], sizes = [8, 16], strides = [1, 1]} : vector<8x28xf32> to vector<8x16xf32>
    %216 = vector.extract_strided_slice %211 {offsets = [0, 8], sizes = [8, 16], strides = [1, 1]} : vector<8x28xf32> to vector<8x16xf32>
    %217 = vector.extract_strided_slice %211 {offsets = [0, 10], sizes = [8, 16], strides = [1, 1]} : vector<8x28xf32> to vector<8x16xf32>
    %218 = vector.extract_strided_slice %211 {offsets = [0, 12], sizes = [8, 16], strides = [1, 1]} : vector<8x28xf32> to vector<8x16xf32>
    %219 = tpu.concatenate %212, %213, %214, %215, %216, %217, %218 in 0 : vector<8x16xf32>, vector<8x16xf32>, vector<8x16xf32>, vector<8x16xf32>, vector<8x16xf32>, vector<8x16xf32>, vector<8x16xf32> -> vector<56x16xf32>
    %cst_83 = arith.constant dense<0.000000e+00> : vector<16x16xf32>
    %220 = tpu.matmul %0, %219, %cst_83 {dimension_numbers = #tpu.dot_dimension_numbers<[1], [0], [0], [1], [0, 0, 1, 1], [], []>} : vector<16x56xf32>, vector<56x16xf32>, vector<16x16xf32> -> vector<16x16xf32>
    %221 = vector.broadcast %1 : vector<16x1xf32> to vector<16x16xf32>
    %222 = arith.addf %220, %221 : vector<16x16xf32>
    %c13_84 = arith.constant 13 : index
    %c0_85 = arith.constant 0 : index
    %c0_86 = arith.constant 0 : index
    %223 = vector.load %arg4[%c13_84, %c0_85, %c0_86] : memref<16x16x16xf32, #tpu.memory_space<vmem>>, vector<1x16x16xf32>
    %224 = vector.shape_cast %223 : vector<1x16x16xf32> to vector<16x16xf32>
    %225 = vector.shape_cast %222 : vector<16x16xf32> to vector<1x16x16xf32>
    tpu.vector_store %arg4[%c13_84, %c0_85, %c0_86], %225 {strides = array<i32>} : memref<16x16x16xf32, #tpu.memory_space<vmem>>, vector<1x16x16xf32>,
    %c14 = arith.constant 14 : index
    %c0_87 = arith.constant 0 : index
    %c0_88 = arith.constant 0 : index
    %226 = vector.load %arg3[%c14, %c0_87, %c0_88] : memref<16x8x28xf32, #tpu.memory_space<vmem>>, vector<1x8x28xf32>
    %227 = vector.shape_cast %226 : vector<1x8x28xf32> to vector<8x28xf32>
    %228 = vector.extract_strided_slice %227 {offsets = [0, 0], sizes = [8, 16], strides = [1, 1]} : vector<8x28xf32> to vector<8x16xf32>
    %229 = vector.extract_strided_slice %227 {offsets = [0, 2], sizes = [8, 16], strides = [1, 1]} : vector<8x28xf32> to vector<8x16xf32>
    %230 = vector.extract_strided_slice %227 {offsets = [0, 4], sizes = [8, 16], strides = [1, 1]} : vector<8x28xf32> to vector<8x16xf32>
    %231 = vector.extract_strided_slice %227 {offsets = [0, 6], sizes = [8, 16], strides = [1, 1]} : vector<8x28xf32> to vector<8x16xf32>
    %232 = vector.extract_strided_slice %227 {offsets = [0, 8], sizes = [8, 16], strides = [1, 1]} : vector<8x28xf32> to vector<8x16xf32>
    %233 = vector.extract_strided_slice %227 {offsets = [0, 10], sizes = [8, 16], strides = [1, 1]} : vector<8x28xf32> to vector<8x16xf32>
    %234 = vector.extract_strided_slice %227 {offsets = [0, 12], sizes = [8, 16], strides = [1, 1]} : vector<8x28xf32> to vector<8x16xf32>
    %235 = tpu.concatenate %228, %229, %230, %231, %232, %233, %234 in 0 : vector<8x16xf32>, vector<8x16xf32>, vector<8x16xf32>, vector<8x16xf32>, vector<8x16xf32>, vector<8x16xf32>, vector<8x16xf32> -> vector<56x16xf32>
    %cst_89 = arith.constant dense<0.000000e+00> : vector<16x16xf32>
    %236 = tpu.matmul %0, %235, %cst_89 {dimension_numbers = #tpu.dot_dimension_numbers<[1], [0], [0], [1], [0, 0, 1, 1], [], []>} : vector<16x56xf32>, vector<56x16xf32>, vector<16x16xf32> -> vector<16x16xf32>
    %237 = vector.broadcast %1 : vector<16x1xf32> to vector<16x16xf32>
    %238 = arith.addf %236, %237 : vector<16x16xf32>
    %c14_90 = arith.constant 14 : index
    %c0_91 = arith.constant 0 : index
    %c0_92 = arith.constant 0 : index
    %239 = vector.load %arg4[%c14_90, %c0_91, %c0_92] : memref<16x16x16xf32, #tpu.memory_space<vmem>>, vector<1x16x16xf32>
    %240 = vector.shape_cast %239 : vector<1x16x16xf32> to vector<16x16xf32>
    %241 = vector.shape_cast %238 : vector<16x16xf32> to vector<1x16x16xf32>
    tpu.vector_store %arg4[%c14_90, %c0_91, %c0_92], %241 {strides = array<i32>} : memref<16x16x16xf32, #tpu.memory_space<vmem>>, vector<1x16x16xf32>,
    %c15 = arith.constant 15 : index
    %c0_93 = arith.constant 0 : index
    %c0_94 = arith.constant 0 : index
    %242 = vector.load %arg3[%c15, %c0_93, %c0_94] : memref<16x8x28xf32, #tpu.memory_space<vmem>>, vector<1x8x28xf32>
    %243 = vector.shape_cast %242 : vector<1x8x28xf32> to vector<8x28xf32>
    %244 = vector.extract_strided_slice %243 {offsets = [0, 0], sizes = [8, 16], strides = [1, 1]} : vector<8x28xf32> to vector<8x16xf32>
    %245 = vector.extract_strided_slice %243 {offsets = [0, 2], sizes = [8, 16], strides = [1, 1]} : vector<8x28xf32> to vector<8x16xf32>
    %246 = vector.extract_strided_slice %243 {offsets = [0, 4], sizes = [8, 16], strides = [1, 1]} : vector<8x28xf32> to vector<8x16xf32>
    %247 = vector.extract_strided_slice %243 {offsets = [0, 6], sizes = [8, 16], strides = [1, 1]} : vector<8x28xf32> to vector<8x16xf32>
    %248 = vector.extract_strided_slice %243 {offsets = [0, 8], sizes = [8, 16], strides = [1, 1]} : vector<8x28xf32> to vector<8x16xf32>
    %249 = vector.extract_strided_slice %243 {offsets = [0, 10], sizes = [8, 16], strides = [1, 1]} : vector<8x28xf32> to vector<8x16xf32>
    %250 = vector.extract_strided_slice %243 {offsets = [0, 12], sizes = [8, 16], strides = [1, 1]} : vector<8x28xf32> to vector<8x16xf32>
    %251 = tpu.concatenate %244, %245, %246, %247, %248, %249, %250 in 0 : vector<8x16xf32>, vector<8x16xf32>, vector<8x16xf32>, vector<8x16xf32>, vector<8x16xf32>, vector<8x16xf32>, vector<8x16xf32> -> vector<56x16xf32>
    %cst_95 = arith.constant dense<0.000000e+00> : vector<16x16xf32>
    %252 = tpu.matmul %0, %251, %cst_95 {dimension_numbers = #tpu.dot_dimension_numbers<[1], [0], [0], [1], [0, 0, 1, 1], [], []>} : vector<16x56xf32>, vector<56x16xf32>, vector<16x16xf32> -> vector<16x16xf32>
    %253 = vector.broadcast %1 : vector<16x1xf32> to vector<16x16xf32>
    %254 = arith.addf %252, %253 : vector<16x16xf32>
    %c15_96 = arith.constant 15 : index
    %c0_97 = arith.constant 0 : index
    %c0_98 = arith.constant 0 : index
    %255 = vector.load %arg4[%c15_96, %c0_97, %c0_98] : memref<16x16x16xf32, #tpu.memory_space<vmem>>, vector<1x16x16xf32>
    %256 = vector.shape_cast %255 : vector<1x16x16xf32> to vector<16x16xf32>
    %257 = vector.shape_cast %254 : vector<16x16xf32> to vector<1x16x16xf32>
    tpu.vector_store %arg4[%c15_96, %c0_97, %c0_98], %257 {strides = array<i32>} : memref<16x16x16xf32, #tpu.memory_space<vmem>>, vector<1x16x16xf32>,
    return
  }
  func.func @transform_0(%arg0: i32) -> (i32, i32) {
    %c0_i32 = arith.constant 0 : i32
    %c0_i32_0 = arith.constant 0 : i32
    %c0_i32_1 = arith.constant 0 : i32
    return %c0_i32, %c0_i32_0 : i32, i32
  }
  func.func @transform_1(%arg0: i32) -> (i32, i32) {
    %c0_i32 = arith.constant 0 : i32
    %c0_i32_0 = arith.constant 0 : i32
    %c0_i32_1 = arith.constant 0 : i32
    return %c0_i32, %c0_i32_0 : i32, i32
  }
  func.func @transform_2(%arg0: i32) -> (i32, i32, i32) {
    %c0_i32 = arith.constant 0 : i32
    %c0_i32_0 = arith.constant 0 : i32
    %c0_i32_1 = arith.constant 0 : i32
    return %arg0, %c0_i32, %c0_i32_0 : i32, i32, i32
  }
  func.func @transform_3(%arg0: i32) -> (i32, i32, i32) {
    %c0_i32 = arith.constant 0 : i32
    %c0_i32_0 = arith.constant 0 : i32
    %c0_i32_1 = arith.constant 0 : i32
    return %arg0, %c0_i32, %c0_i32_0 : i32, i32, i32
  }
}

</mosaic_0001>

<bundles_post_ra>
// kernel: dilated_inception_forward.1
= control target key start
LH: loop header
LB: loop body
LE: loop exit
PB: predicated region body
PF: predicated region fallthrough
CT: control target
= control target key end

     0   :  { %s2788_s12 = smov 0   ;;  %s3145_s0 = inlined_call_operand.vmem [shape: f32[16,56], index: 0, kind: input, shape index: {}]   ;;  %s3146_s1 = inlined_call_operand.vmem [shape: f32[16,1], index: 1, kind: input, shape index: {}]   ;;  %s3147_s2 = inlined_call_operand.vmem [shape: f32[48,8,28], index: 2, kind: input, shape index: {}]   ;;  %s3148_s3 = inlined_call_operand.vmem [shape: f32[48,16,16], index: 3, kind: output, shape index: {}]  }
   0x1 LB: > { %s1838_s13 = sadd.s32 4294967295, %s2759_s12   ;;  %p1842_p0 = scmp.ge.s32.totalorder %s2759_s12, 1  ;;  %s2759_s12 = sphi %s2788_s12, %s13_s12  }
   0x2   : > { %p138_p1 = scmp.lt.s32.totalorder %s2759_s12, 4 }
   0x4   : > { %p139_p2 = pnand %p1842_p0, %p138_p1 }
   0x5   : > { %s1843_s14 = sshll.u32 (!%p139_p2), %s1838_s13, 4  ;;  %s2761_s19 = smov (!%p139_p2), 122   ;;  %v2817_v3 = vld [vmem:[%s3145_s0] sm:$0xff] (!%p139_p2)  ;;  %vm210_vm0 = vcmask (!%p139_p2), 457728   ;;  %v2767_v25 = vmov (!%p139_p2), 0   ;;  %v179_v26 = vld [vmem:[%s3146_s1 + $0x8] sm:$0xff] (!%p139_p2) }
   0x6   : > { %142 = sbr.rel (%p139_p2) target bundleno = 473 (0x1d9), region = 32  ;;  %p164_p3 = scmp.lt.s32.totalorder (!%p139_p2), %s1843_s14, 47  ;;  %2086 = vmatprep.mubr.msk.f32.mxu0 (!%p139_p2), %vm210_vm0, %v2817_v3  ;;  %2103 = vmatprep.mubr.msk.f32.mxu1 (!%p139_p2), %vm210_vm0, %v2817_v3  ;;  %v178_v27 = vld [vmem:[%s3146_s1] sm:$0xff] (!%p139_p2)  ;;  %v2962_v58 = vld [vmem:[%s3145_s0 + $0x8] sm:$0xff] (!%p139_p2)  ;;  %vm292_vm1 = vcmask (!%p139_p2), 130048  }
   0x7   : > { %s2762_s20 = smov (!%p139_p2), 126   ;;  %s2763_s23 = smov (!%p139_p2), 120   ;;  %2752 = vset.pattern.permute.xlu1 (!%p139_p2), %v2767_v25  ;;  %2751 = vset.pattern.permute.xlu0 (!%p139_p2), %v2767_v25 }
   0x8   : > { %s2764_s24 = smov (!%p139_p2), 124   ;;  %s2765_s25 = smov (!%p139_p2), 116  }
   0x9   : > { %s2766_s26 = smov (!%p139_p2), 118  }
   0xd   : > { %s3150_s14 = smov (!%p164_p3, %s1843_s14), 47 }
   0xe   : > { %s1844_s15 = sshll.u32 %s3150_s14, 3  ;;  %s1927_s6 = sshll.u32 %s3150_s14, 4 }
   0xf   : > { %s2802_s18 = scalar_lea.vmem %s3147_s2, %s1844_s15  ;;  %s3044_s9 = scalar_lea.vmem %s3148_s3, %s1927_s6 }
  0x10   : > { %v2805_v0 = vld [vmem:[%s2802_s18] sm:$0xff]  ;;  %v2808_v1 = vld [vmem:[%s2802_s18 + $0x8] sm:$0xff]  ;;  %v2822_v4 = vld [vmem:[%s2802_s18 + $0x10] sm:$0xff] }
  0x11   : > { %v2561_v2 = vpack.i.bf16 %v2808_v1, %v2805_v0  ;;  %v2825_v5 = vld [vmem:[%s2802_s18 + $0x18] sm:$0xff]  ;;  %v2844_v7 = vld [vmem:[%s2802_s18 + $0x20] sm:$0xff]  ;;  %v2847_v8 = vld [vmem:[%s2802_s18 + $0x28] sm:$0xff] }
  0x12   : > { %v2576_v6 = vpack.i.bf16 %v2825_v5, %v2822_v4  ;;  %v2606_v9 = vpack.i.bf16 %v2847_v8, %v2844_v7  ;;  %v2860_v10 = vld [vmem:[%s2802_s18 + $0x30] sm:$0xff]  ;;  %v2863_v11 = vld [vmem:[%s2802_s18 + $0x38] sm:$0xff]  ;;  %v2878_v13 = vld [vmem:[%s2802_s18 + $0x40] sm:$0xff] }
  0x13   : > { %2562 = vrot.lane.b32.xlu1 %v2561_v2, %s2761_s19  ;;  %2552 = vrot.lane.b32.xlu0 %v2561_v2, %s2762_s20  ;;  %v2626_v12 = vpack.i.bf16 %v2863_v11, %v2860_v10  ;;  %v2881_v14 = vld [vmem:[%s2802_s18 + $0x48] sm:$0xff]  ;;  %v2894_v16 = vld [vmem:[%s2802_s18 + $0x50] sm:$0xff] }
  0x14   : > { %v2656_v15 = vpack.i.bf16 %v2881_v14, %v2878_v13  ;;  %v2897_v17 = vld [vmem:[%s2802_s18 + $0x58] sm:$0xff]  ;;  %v2912_v19 = vld [vmem:[%s2802_s18 + $0x60] sm:$0xff]  ;;  %v2915_v20 = vld [vmem:[%s2802_s18 + $0x68] sm:$0xff] }
  0x15   : > { %v2676_v18 = vpack.i.bf16 %v2897_v17, %v2894_v16  ;;  %v2701_v21 = vpack.i.bf16 %v2915_v20, %v2912_v19  ;;  %v2928_v22 = vld [vmem:[%s2802_s18 + $0x70] sm:$0xff]  ;;  %v2931_v23 = vld [vmem:[%s2802_s18 + $0x78] sm:$0xff] }
  0x16   : > { %v2726_v24 = vpack.i.bf16 %v2931_v23, %v2928_v22 }
  0x17   : > { %2567 = vrot.lane.b32.xlu1 %v2561_v2, %s2763_s23  ;;  %2557 = vrot.lane.b32.xlu0 %v2561_v2, %s2764_s24 }
  0x1b   : > { %197 = vrot.lane.b32.xlu1 %v2805_v0, %s2765_s25  ;;  %2572 = vrot.lane.b32.xlu0 %v2561_v2, %s2766_s26 }
  0x1f   : > { %2577 = vrot.lane.b32.xlu1 %v2576_v6, %s2762_s20  ;;  %313 = vrot.lane.b32.xlu0 %v2808_v1, %s2765_s25 }
  0x23   : > { %2587 = vrot.lane.b32.xlu1 %v2576_v6, %s2761_s19  ;;  %2582 = vrot.lane.b32.xlu0 %v2576_v6, %s2764_s24 }
  0x27   : > { %2597 = vrot.lane.b32.xlu1 %v2576_v6, %s2766_s26  ;;  %2592 = vrot.lane.b32.xlu0 %v2576_v6, %s2763_s23 }
  0x2b   : > { %511 = vrot.lane.b32.xlu1 %v2825_v5, %s2765_s25  ;;  %412 = vrot.lane.b32.xlu0 %v2822_v4, %s2765_s25 }
  0x2f   : > { %2607 = vrot.lane.b32.xlu1 %v2606_v9, %s2764_s24  ;;  %2602 = vrot.lane.b32.xlu0 %v2606_v9, %s2762_s20 }
  0x33   : > { %2617 = vrot.lane.b32.xlu1 %v2606_v9, %s2763_s23  ;;  %2612 = vrot.lane.b32.xlu0 %v2606_v9, %s2761_s19 }
  0x37   : > { %610 = vrot.lane.b32.xlu1 %v2844_v7, %s2765_s25  ;;  %2622 = vrot.lane.b32.xlu0 %v2606_v9, %s2766_s26 }
  0x3b   : > { %2627 = vrot.lane.b32.xlu1 %v2626_v12, %s2762_s20  ;;  %709 = vrot.lane.b32.xlu0 %v2847_v8, %s2765_s25 }
  0x3f   : > { %2637 = vrot.lane.b32.xlu1 %v2626_v12, %s2761_s19  ;;  %2632 = vrot.lane.b32.xlu0 %v2626_v12, %s2764_s24 }
  0x43   : > { %2647 = vrot.lane.b32.xlu1 %v2626_v12, %s2766_s26  ;;  %2642 = vrot.lane.b32.xlu0 %v2626_v12, %s2763_s23 }
  0x47   : > { %907 = vrot.lane.b32.xlu1 %v2863_v11, %s2765_s25  ;;  %808 = vrot.lane.b32.xlu0 %v2860_v10, %s2765_s25 }
  0x4b   : > { %2657 = vrot.lane.b32.xlu1 %v2656_v15, %s2764_s24  ;;  %2652 = vrot.lane.b32.xlu0 %v2656_v15, %s2762_s20 }
  0x4f   : > { %2667 = vrot.lane.b32.xlu1 %v2656_v15, %s2763_s23  ;;  %2662 = vrot.lane.b32.xlu0 %v2656_v15, %s2761_s19 }
  0x53   : > { %1006 = vrot.lane.b32.xlu1 %v2878_v13, %s2765_s25  ;;  %2672 = vrot.lane.b32.xlu0 %v2656_v15, %s2766_s26 }
  0x57   : > { %2677 = vrot.lane.b32.xlu1 %v2676_v18, %s2762_s20  ;;  %1105 = vrot.lane.b32.xlu0 %v2881_v14, %s2765_s25 }
  0x5b   : > { %2687 = vrot.lane.b32.xlu1 %v2676_v18, %s2761_s19  ;;  %2682 = vrot.lane.b32.xlu0 %v2676_v18, %s2764_s24 }
  0x5f   : > { %2697 = vrot.lane.b32.xlu1 %v2676_v18, %s2766_s26  ;;  %2692 = vrot.lane.b32.xlu0 %v2676_v18, %s2763_s23 }
  0x63   : > { %1204 = vrot.lane.b32.xlu0 %v2894_v16, %s2765_s25  ;;  %1303 = vrot.lane.b32.xlu1 %v2897_v17, %s2765_s25 }
  0x67   : > { %2702 = vrot.lane.b32.xlu0 %v2701_v21, %s2762_s20  ;;  %2707 = vrot.lane.b32.xlu1 %v2701_v21, %s2764_s24 }
  0x6b   : > { %2712 = vrot.lane.b32.xlu0 %v2701_v21, %s2761_s19  ;;  %2717 = vrot.lane.b32.xlu1 %v2701_v21, %s2763_s23 }
  0x6f   : > { %2722 = vrot.lane.b32.xlu0 %v2701_v21, %s2766_s26  ;;  %1402 = vrot.lane.b32.xlu1 %v2912_v19, %s2765_s25 }
  0x73   : > { %2727 = vrot.lane.b32.xlu1 %v2726_v24, %s2762_s20  ;;  %1501 = vrot.lane.b32.xlu0 %v2915_v20, %s2765_s25 }
  0x77   : > { %2737 = vrot.lane.b32.xlu1 %v2726_v24, %s2761_s19  ;;  %2732 = vrot.lane.b32.xlu0 %v2726_v24, %s2764_s24 }
  0x7b   : > { %2747 = vrot.lane.b32.xlu1 %v2726_v24, %s2766_s26  ;;  %2742 = vrot.lane.b32.xlu0 %v2726_v24, %s2763_s23 }
  0x7f   : > { %1699 = vrot.lane.b32.xlu1 %v2931_v23, %s2765_s25  ;;  %1600 = vrot.lane.b32.xlu0 %v2928_v22, %s2765_s25 }
  0x83   : > { %207 = vperm.xlu1 %2752, %v179_v26   ;;  %202 = vperm.xlu0 %2751, %v178_v27  }
  0x85   : > { %v2563_v28 = vpop.permute.xlu1 %2562  ;;  %v2553_v29 = vpop.permute.xlu0 %2552 }
  0x86   : > { %v2555_v30 = vunpack.i.h.bf16 %v2553_v29  ;;  %v2554_v31 = vunpack.i.l.bf16 %v2553_v29  ;;  %v2565_v36 = vunpack.i.h.bf16 %v2563_v28  ;;  %v2564_v37 = vunpack.i.l.bf16 %v2563_v28 }
  0x88   : > { %v2344_v32 = vpack.c.bf16 %v2554_v31, %v2805_v0  ;;  %v2356_v33 = vpack.c.bf16 %v2555_v30, %v2808_v1 }
  0x89   : > { %v2568_v34 = vpop.permute.xlu1 %2567  ;;  %v2558_v35 = vpop.permute.xlu0 %2557 }
  0x8a   : > { %v2560_v38 = vunpack.i.h.bf16 %v2558_v35  ;;  %v2559_v39 = vunpack.i.l.bf16 %v2558_v35  ;;  %2345 = vmatprep.subr.bf16.mxu0 %v2344_v32  ;;  %2357 = vmatprep.subr.bf16.mxu1 %v2356_v33  ;;  %v2570_v44 = vunpack.i.h.bf16 %v2568_v34  ;;  %v2569_v45 = vunpack.i.l.bf16 %v2568_v34 }
  0x8b   : > { %2347 = vmatpush3.bf16.msra.mxu0 %v2344_v32  ;;  %2359 = vmatpush3.bf16.msra.mxu1 %v2356_v33 }
  0x8c   : > { %v2360_v40 = vpack.c.bf16 %v2565_v36, %v2560_v38  ;;  %v2348_v41 = vpack.c.bf16 %v2564_v37, %v2559_v39 }
  0x8d   : > { %v198_v42 = vpop.permute.xlu1 %197  ;;  %v2573_v43 = vpop.permute.xlu0 %2572 }
  0x8e   : > { %v2575_v46 = vunpack.i.h.bf16 %v2573_v43  ;;  %v2574_v47 = vunpack.i.l.bf16 %v2573_v43  ;;  %2349 = vmatprep.subr.bf16.mxu0 %v2348_v41  ;;  %2361 = vmatprep.subr.bf16.mxu1 %v2360_v40 }
  0x8f   : > { %2351 = vmatpush3.bf16.msra.mxu0 %v2348_v41  ;;  %2363 = vmatpush3.bf16.msra.mxu1 %v2360_v40 }
  0x90   : > { %v2364_v48 = vpack.c.bf16 %v2575_v46, %v2570_v44  ;;  %v2352_v49 = vpack.c.bf16 %v2574_v47, %v2569_v45 }
  0x91   : > { %v2578_v50 = vpop.permute.xlu1 %2577  ;;  %v314_v51 = vpop.permute.xlu0 %313 }
  0x92   : > { %v2580_v52 = vunpack.i.h.bf16 %v2578_v50  ;;  %v2579_v53 = vunpack.i.l.bf16 %v2578_v50  ;;  %2353 = vmatprep.subr.bf16.mxu0 %v2352_v49  ;;  %2365 = vmatprep.subr.bf16.mxu1 %v2364_v48 }
  0x93   : > { %2355 = vmatpush3.bf16.msra.mxu0 %v2352_v49  ;;  %2367 = vmatpush3.bf16.msra.mxu1 %v2364_v48 }
  0x94   : > { %2084 = vmatprep.subr.mxu0 %v198_v42  ;;  %2101 = vmatprep.subr.mxu1 %v314_v51  ;;  %v2380_v54 = vpack.c.bf16 %v2580_v52, %v2825_v5  ;;  %v2368_v55 = vpack.c.bf16 %v2579_v53, %v2822_v4 }
  0x95   : > { %v2588_v56 = vpop.permute.xlu1 %2587  ;;  %v2583_v57 = vpop.permute.xlu0 %2582 }
  0x96   : > { %v2590_v59 = vunpack.i.h.bf16 %v2588_v56  ;;  %v2589_v60 = vunpack.i.l.bf16 %v2588_v56  ;;  %v2585_v61 = vunpack.i.h.bf16 %v2583_v57  ;;  %v2584_v62 = vunpack.i.l.bf16 %v2583_v57 }
  0x97   : > { %2085 = vmatpush3.msra.mxu0 %v198_v42  ;;  %2102 = vmatpush3.msra.mxu1 %v314_v51 }
  0x98   : > { %v2384_v63 = vpack.c.bf16 %v2590_v59, %v2585_v61  ;;  %v2372_v0 = vpack.c.bf16 %v2589_v60, %v2584_v62  ;;  %2087 = vmatmul.mubr.msk.f32.vlgmr.msra.gmra.mrb[0].mxu0 %vm210_vm0, %v2962_v58  ;;  %2104 = vmatmul.mubr.msk.f32.vlgmr.msra.gmra.mrb[0].mxu1 %vm210_vm0, %v2962_v58 }
  0x99   : > { %2369 = vmatprep.subr.bf16.mxu0 %v2368_v55  ;;  %2381 = vmatprep.subr.bf16.mxu1 %v2380_v54  ;;  %v2598_v1 = vpop.permute.xlu1 %2597  ;;  %v2593_v2 = vpop.permute.xlu0 %2592 }
  0x9a   : > { %v2600_v4 = vunpack.i.h.bf16 %v2598_v1  ;;  %v2599_v5 = vunpack.i.l.bf16 %v2598_v1  ;;  %v2595_v6 = vunpack.i.h.bf16 %v2593_v2  ;;  %v2594_v9 = vunpack.i.l.bf16 %v2593_v2  ;;  %2371 = vmatpush3.bf16.msra.mxu0 %v2368_v55  ;;  %2383 = vmatpush3.bf16.msra.mxu1 %v2380_v54 }
  0x9b   : > { %2373 = vmatprep.subr.bf16.mxu0 %v2372_v0  ;;  %2385 = vmatprep.subr.bf16.mxu1 %v2384_v63 }
  0x9c   : > { %v2388_v12 = vpack.c.bf16 %v2600_v4, %v2595_v6  ;;  %v2376_v15 = vpack.c.bf16 %v2599_v5, %v2594_v9  ;;  %2120 = vmatprep.mubr.msk.f32.mxu0 %vm210_vm0, %v2817_v3  ;;  %2137 = vmatprep.mubr.msk.f32.mxu1 %vm210_vm0, %v2817_v3 }
  0x9d   : > { %v512_v18 = vpop.permute.xlu1 %511  ;;  %v413_v21 = vpop.permute.xlu0 %412 }
  0x9e   : > { %2375 = vmatpush3.bf16.msra.mxu0 %v2372_v0  ;;  %2387 = vmatpush3.bf16.msra.mxu1 %v2384_v63 }
  0x9f   : > { %2377 = vmatprep.subr.bf16.mxu0 %v2376_v15  ;;  %2389 = vmatprep.subr.bf16.mxu1 %v2388_v12 }
  0xa1   : > { %v2608_v24 = vpop.permute.xlu1 %2607  ;;  %v2603_v25 = vpop.permute.xlu0 %2602 }
  0xa2   : > { %v2605_v26 = vunpack.i.h.bf16 %v2603_v25  ;;  %v2604_v27 = vunpack.i.l.bf16 %v2603_v25  ;;  %2379 = vmatpush3.bf16.msra.mxu0 %v2376_v15  ;;  %2391 = vmatpush3.bf16.msra.mxu1 %v2388_v12  ;;  %v2610_v32 = vunpack.i.h.bf16 %v2608_v24  ;;  %v2609_v33 = vunpack.i.l.bf16 %v2608_v24 }
  0xa3   : > { %2118 = vmatprep.subr.mxu0 %v413_v21  ;;  %2135 = vmatprep.subr.mxu1 %v512_v18 }
  0xa4   : > { %v2404_v28 = vpack.c.bf16 %v2605_v26, %v2847_v8  ;;  %v2392_v29 = vpack.c.bf16 %v2604_v27, %v2844_v7 }
  0xa5   : > { %v2618_v30 = vpop.permute.xlu1 %2617  ;;  %v2613_v31 = vpop.permute.xlu0 %2612 }
  0xa6   : > { %v2615_v34 = vunpack.i.h.bf16 %v2613_v31  ;;  %v2614_v35 = vunpack.i.l.bf16 %v2613_v31  ;;  %2119 = vmatpush3.msra.mxu0 %v413_v21  ;;  %2136 = vmatpush3.msra.mxu1 %v512_v18  ;;  %v2620_v38 = vunpack.i.h.bf16 %v2618_v30  ;;  %v2619_v39 = vunpack.i.l.bf16 %v2618_v30 }
  0xa7   : > { %2121 = vmatmul.mubr.msk.f32.vlgmr.msra.gmra.mrb[2].mxu0 %vm210_vm0, %v2962_v58  ;;  %2138 = vmatmul.mubr.msk.f32.vlgmr.msra.gmra.mrb[2].mxu1 %vm210_vm0, %v2962_v58 }
  0xa8   : > { %v2408_v36 = vpack.c.bf16 %v2615_v34, %v2610_v32  ;;  %v2396_v37 = vpack.c.bf16 %v2614_v35, %v2609_v33  ;;  %2393 = vmatprep.subr.bf16.mxu0 %v2392_v29  ;;  %2405 = vmatprep.subr.bf16.mxu1 %v2404_v28 }
  0xa9   : > { %2395 = vmatpush3.bf16.msra.mxu0 %v2392_v29  ;;  %2407 = vmatpush3.bf16.msra.mxu1 %v2404_v28  ;;  %v611_v7 = vpop.permute.xlu1 %610  ;;  %v2623_v8 = vpop.permute.xlu0 %2622 }
  0xaa   : > { %v2625_v40 = vunpack.i.h.bf16 %v2623_v8  ;;  %v2624_v41 = vunpack.i.l.bf16 %v2623_v8  ;;  %2397 = vmatprep.subr.bf16.mxu0 %v2396_v37  ;;  %2409 = vmatprep.subr.bf16.mxu1 %v2408_v36 }
  0xab   : > { %2154 = vmatprep.mubr.msk.f32.mxu0 %vm210_vm0, %v2817_v3  ;;  %2171 = vmatprep.mubr.msk.f32.mxu1 %vm210_vm0, %v2817_v3 }
  0xac   : > { %v2412_v42 = vpack.c.bf16 %v2625_v40, %v2620_v38  ;;  %v2400_v43 = vpack.c.bf16 %v2624_v41, %v2619_v39 }
  0xad   : > { %2399 = vmatpush3.bf16.msra.mxu0 %v2396_v37  ;;  %2411 = vmatpush3.bf16.msra.mxu1 %v2408_v36  ;;  %v2628_v44 = vpop.permute.xlu1 %2627  ;;  %v710_v45 = vpop.permute.xlu0 %709 }
  0xae   : > { %2401 = vmatprep.subr.bf16.mxu0 %v2400_v43  ;;  %2413 = vmatprep.subr.bf16.mxu1 %v2412_v42  ;;  %v2630_v46 = vunpack.i.h.bf16 %v2628_v44  ;;  %v2629_v47 = vunpack.i.l.bf16 %v2628_v44 }
  0xb0   : > { %v2428_v54 = vpack.c.bf16 %v2630_v46, %v2863_v11  ;;  %v2416_v55 = vpack.c.bf16 %v2629_v47, %v2860_v10 }
  0xb1   : > { %2403 = vmatpush3.bf16.msra.mxu0 %v2400_v43  ;;  %2415 = vmatpush3.bf16.msra.mxu1 %v2412_v42  ;;  %v2638_v48 = vpop.permute.xlu1 %2637  ;;  %v2633_v49 = vpop.permute.xlu0 %2632 }
  0xb2   : > { %2152 = vmatprep.subr.mxu0 %v611_v7  ;;  %2169 = vmatprep.subr.mxu1 %v710_v45  ;;  %v2640_v50 = vunpack.i.h.bf16 %v2638_v48  ;;  %v2639_v51 = vunpack.i.l.bf16 %v2638_v48  ;;  %v2635_v52 = vunpack.i.h.bf16 %v2633_v49  ;;  %v2634_v53 = vunpack.i.l.bf16 %v2633_v49 }
  0xb4   : > { %v2432_v56 = vpack.c.bf16 %v2640_v50, %v2635_v52  ;;  %v2420_v57 = vpack.c.bf16 %v2639_v51, %v2634_v53 }
  0xb5   : > { %2153 = vmatpush3.msra.mxu0 %v611_v7  ;;  %2170 = vmatpush3.msra.mxu1 %v710_v45  ;;  %v2648_v59 = vpop.permute.xlu1 %2647  ;;  %v2643_v60 = vpop.permute.xlu0 %2642 }
  0xb6   : > { %2155 = vmatmul.mubr.msk.f32.vlgmr.msra.gmra.mrb[4].mxu0 %vm210_vm0, %v2962_v58  ;;  %2172 = vmatmul.mubr.msk.f32.vlgmr.msra.gmra.mrb[4].mxu1 %vm210_vm0, %v2962_v58  ;;  %v2650_v61 = vunpack.i.h.bf16 %v2648_v59  ;;  %v2649_v62 = vunpack.i.l.bf16 %v2648_v59  ;;  %v2645_v63 = vunpack.i.h.bf16 %v2643_v60  ;;  %v2644_v0 = vunpack.i.l.bf16 %v2643_v60 }
  0xb7   : > { %2417 = vmatprep.subr.bf16.mxu0 %v2416_v55  ;;  %2429 = vmatprep.subr.bf16.mxu1 %v2428_v54 }
  0xb8   : > { %2419 = vmatpush3.bf16.msra.mxu0 %v2416_v55  ;;  %2431 = vmatpush3.bf16.msra.mxu1 %v2428_v54  ;;  %v2436_v10 = vpack.c.bf16 %v2650_v61, %v2645_v63  ;;  %v2424_v11 = vpack.c.bf16 %v2649_v62, %v2644_v0 }
  0xb9   : > { %2421 = vmatprep.subr.bf16.mxu0 %v2420_v57  ;;  %2433 = vmatprep.subr.bf16.mxu1 %v2432_v56  ;;  %v908_v1 = vpop.permute.xlu1 %907  ;;  %v809_v2 = vpop.permute.xlu0 %808 }
  0xba   : > { %2188 = vmatprep.mubr.msk.f32.mxu0 %vm210_vm0, %v2817_v3  ;;  %2205 = vmatprep.mubr.msk.f32.mxu1 %vm210_vm0, %v2817_v3 }
  0xbc   : > { %2423 = vmatpush3.bf16.msra.mxu0 %v2420_v57  ;;  %2435 = vmatpush3.bf16.msra.mxu1 %v2432_v56 }
  0xbd   : > { %2425 = vmatprep.subr.bf16.mxu0 %v2424_v11  ;;  %2437 = vmatprep.subr.bf16.mxu1 %v2436_v10  ;;  %v2658_v4 = vpop.permute.xlu1 %2657  ;;  %v2653_v5 = vpop.permute.xlu0 %2652 }
  0xbe   : > { %v2655_v6 = vunpack.i.h.bf16 %v2653_v5  ;;  %v2654_v9 = vunpack.i.l.bf16 %v2653_v5  ;;  %v2660_v12 = vunpack.i.h.bf16 %v2658_v4  ;;  %v2659_v15 = vunpack.i.l.bf16 %v2658_v4 }
  0xc0   : > { %2427 = vmatpush3.bf16.msra.mxu0 %v2424_v11  ;;  %2439 = vmatpush3.bf16.msra.mxu1 %v2436_v10  ;;  %v2452_v24 = vpack.c.bf16 %v2655_v6, %v2881_v14  ;;  %v2440_v25 = vpack.c.bf16 %v2654_v9, %v2878_v13 }
  0xc1   : > { %2186 = vmatprep.subr.mxu0 %v809_v2  ;;  %2203 = vmatprep.subr.mxu1 %v908_v1  ;;  %v2668_v18 = vpop.permute.xlu1 %2667  ;;  %v2663_v21 = vpop.permute.xlu0 %2662 }
  0xc2   : > { %v2665_v26 = vunpack.i.h.bf16 %v2663_v21  ;;  %v2664_v27 = vunpack.i.l.bf16 %v2663_v21  ;;  %v2670_v32 = vunpack.i.h.bf16 %v2668_v18  ;;  %v2669_v33 = vunpack.i.l.bf16 %v2668_v18 }
  0xc4   : > { %v2456_v28 = vpack.c.bf16 %v2665_v26, %v2660_v12  ;;  %v2444_v29 = vpack.c.bf16 %v2664_v27, %v2659_v15  ;;  %2187 = vmatpush3.msra.mxu0 %v809_v2  ;;  %2204 = vmatpush3.msra.mxu1 %v908_v1 }
  0xc5   : > { %2189 = vmatmul.mubr.msk.f32.vlgmr.msra.gmra.mrb[6].mxu0 %vm210_vm0, %v2962_v58  ;;  %2206 = vmatmul.mubr.msk.f32.vlgmr.msra.gmra.mrb[6].mxu1 %vm210_vm0, %v2962_v58  ;;  %v1007_v30 = vpop.permute.xlu1 %1006  ;;  %v2673_v31 = vpop.permute.xlu0 %2672 }
  0xc6   : > { %2441 = vmatprep.subr.bf16.mxu0 %v2440_v25  ;;  %2453 = vmatprep.subr.bf16.mxu1 %v2452_v24  ;;  %v2675_v14 = vunpack.i.h.bf16 %v2673_v31  ;;  %v2674_v13 = vunpack.i.l.bf16 %v2673_v31 }
  0xc7   : > { %2443 = vmatpush3.bf16.msra.mxu0 %v2440_v25  ;;  %2455 = vmatpush3.bf16.msra.mxu1 %v2452_v24 }
  0xc8   : > { %v2460_v34 = vpack.c.bf16 %v2675_v14, %v2670_v32  ;;  %v2448_v35 = vpack.c.bf16 %v2674_v13, %v2669_v33  ;;  %2445 = vmatprep.subr.bf16.mxu0 %v2444_v29  ;;  %2457 = vmatprep.subr.bf16.mxu1 %v2456_v28 }
  0xc9   : > { %v2678_v36 = vpop.permute.xlu1 %2677  ;;  %v1106_v37 = vpop.permute.xlu0 %1105  ;;  %2222 = vmatprep.mubr.msk.f32.mxu0 %vm210_vm0, %v2817_v3  ;;  %2239 = vmatprep.mubr.msk.f32.mxu1 %vm210_vm0, %v2817_v3 }
  0xca   : > { %v2680_v7 = vunpack.i.h.bf16 %v2678_v36  ;;  %v2679_v8 = vunpack.i.l.bf16 %v2678_v36 }
  0xcb   : > { %2447 = vmatpush3.bf16.msra.mxu0 %v2444_v29  ;;  %2459 = vmatpush3.bf16.msra.mxu1 %v2456_v28 }
  0xcc   : > { %2449 = vmatprep.subr.bf16.mxu0 %v2448_v35  ;;  %2461 = vmatprep.subr.bf16.mxu1 %v2460_v34  ;;  %v2476_v44 = vpack.c.bf16 %v2680_v7, %v2897_v17  ;;  %v2464_v45 = vpack.c.bf16 %v2679_v8, %v2894_v16 }
  0xcd   : > { %v2688_v38 = vpop.permute.xlu1 %2687  ;;  %v2683_v39 = vpop.permute.xlu0 %2682 }
  0xce   : > { %v2690_v40 = vunpack.i.h.bf16 %v2688_v38  ;;  %v2689_v41 = vunpack.i.l.bf16 %v2688_v38  ;;  %v2685_v42 = vunpack.i.h.bf16 %v2683_v39  ;;  %v2684_v43 = vunpack.i.l.bf16 %v2683_v39 }
  0xcf   : > { %2451 = vmatpush3.bf16.msra.mxu0 %v2448_v35  ;;  %2463 = vmatpush3.bf16.msra.mxu1 %v2460_v34 }
  0xd0   : > { %2220 = vmatprep.subr.mxu0 %v1007_v30  ;;  %2237 = vmatprep.subr.mxu1 %v1106_v37  ;;  %v2480_v48 = vpack.c.bf16 %v2690_v40, %v2685_v42  ;;  %v2468_v49 = vpack.c.bf16 %v2689_v41, %v2684_v43 }
  0xd1   : > { %v2698_v46 = vpop.permute.xlu1 %2697  ;;  %v2693_v47 = vpop.permute.xlu0 %2692 }
  0xd2   : > { %v2700_v50 = vunpack.i.h.bf16 %v2698_v46  ;;  %v2699_v51 = vunpack.i.l.bf16 %v2698_v46  ;;  %v2695_v52 = vunpack.i.h.bf16 %v2693_v47  ;;  %v2694_v53 = vunpack.i.l.bf16 %v2693_v47 }
  0xd3   : > { %2221 = vmatpush3.msra.mxu0 %v1007_v30  ;;  %2238 = vmatpush3.msra.mxu1 %v1106_v37 }
  0xd4   : > { %2223 = vmatmul.mubr.msk.f32.vlgmr.msra.gmra.mrb[8].mxu0 %vm210_vm0, %v2962_v58  ;;  %2240 = vmatmul.mubr.msk.f32.vlgmr.msra.gmra.mrb[8].mxu1 %vm210_vm0, %v2962_v58  ;;  %v2484_v54 = vpack.c.bf16 %v2700_v50, %v2695_v52  ;;  %v2472_v55 = vpack.c.bf16 %v2699_v51, %v2694_v53 }
  0xd5   : > { %2465 = vmatprep.subr.bf16.mxu0 %v2464_v45  ;;  %2477 = vmatprep.subr.bf16.mxu1 %v2476_v44  ;;  %v1205_v17 = vpop.permute.xlu0 %1204  ;;  %v1304_v16 = vpop.permute.xlu1 %1303 }
  0xd6   : > { %2467 = vmatpush3.bf16.msra.mxu0 %v2464_v45  ;;  %2479 = vmatpush3.bf16.msra.mxu1 %v2476_v44 }
  0xd7   : > { %2469 = vmatprep.subr.bf16.mxu0 %v2468_v49  ;;  %2481 = vmatprep.subr.bf16.mxu1 %v2480_v48 }
  0xd8   : > { %2256 = vmatprep.mubr.msk.f32.mxu0 %vm210_vm0, %v2817_v3  ;;  %2273 = vmatprep.mubr.msk.f32.mxu1 %vm210_vm0, %v2817_v3 }
  0xd9   : > { %v2703_v56 = vpop.permute.xlu0 %2702  ;;  %v2708_v57 = vpop.permute.xlu1 %2707 }
  0xda   : > { %2471 = vmatpush3.bf16.msra.mxu0 %v2468_v49  ;;  %2483 = vmatpush3.bf16.msra.mxu1 %v2480_v48  ;;  %v2705_v59 = vunpack.i.h.bf16 %v2703_v56  ;;  %v2704_v60 = vunpack.i.l.bf16 %v2703_v56  ;;  %v2710_v1 = vunpack.i.h.bf16 %v2708_v57  ;;  %v2709_v2 = vunpack.i.l.bf16 %v2708_v57 }
  0xdb   : > { %2473 = vmatprep.subr.bf16.mxu0 %v2472_v55  ;;  %2485 = vmatprep.subr.bf16.mxu1 %v2484_v54 }
  0xdc   : > { %v2500_v10 = vpack.c.bf16 %v2705_v59, %v2915_v20  ;;  %v2488_v11 = vpack.c.bf16 %v2704_v60, %v2912_v19 }
  0xdd   : > { %v2713_v61 = vpop.permute.xlu0 %2712  ;;  %v2718_v62 = vpop.permute.xlu1 %2717 }
  0xde   : > { %2475 = vmatpush3.bf16.msra.mxu0 %v2472_v55  ;;  %2487 = vmatpush3.bf16.msra.mxu1 %v2484_v54  ;;  %v2715_v63 = vunpack.i.h.bf16 %v2713_v61  ;;  %v2714_v0 = vunpack.i.l.bf16 %v2713_v61  ;;  %v2720_v20 = vunpack.i.h.bf16 %v2718_v62  ;;  %v2719_v19 = vunpack.i.l.bf16 %v2718_v62 }
  0xdf   : > { %2254 = vmatprep.subr.mxu0 %v1205_v17  ;;  %2271 = vmatprep.subr.mxu1 %v1304_v16 }
  0xe0   : > { %v2504_v6 = vpack.c.bf16 %v2715_v63, %v2710_v1  ;;  %v2492_v9 = vpack.c.bf16 %v2714_v0, %v2709_v2 }
  0xe1   : > { %v2723_v4 = vpop.permute.xlu0 %2722  ;;  %v1403_v5 = vpop.permute.xlu1 %1402 }
  0xe2   : > { %2255 = vmatpush3.msra.mxu0 %v1205_v17  ;;  %2272 = vmatpush3.msra.mxu1 %v1304_v16  ;;  %v2725_v12 = vunpack.i.h.bf16 %v2723_v4  ;;  %v2724_v15 = vunpack.i.l.bf16 %v2723_v4 }
  0xe3   : > { %2257 = vmatmul.mubr.msk.f32.vlgmr.msra.gmra.mrb[10].mxu0 %vm210_vm0, %v2962_v58  ;;  %2274 = vmatmul.mubr.msk.f32.vlgmr.msra.gmra.mrb[10].mxu1 %vm210_vm0, %v2962_v58 }
  0xe4   : > { %2489 = vmatprep.subr.bf16.mxu0 %v2488_v11  ;;  %2501 = vmatprep.subr.bf16.mxu1 %v2500_v10  ;;  %v2508_v24 = vpack.c.bf16 %v2725_v12, %v2720_v20  ;;  %v2496_v25 = vpack.c.bf16 %v2724_v15, %v2719_v19 }
  0xe5   : > { %2491 = vmatpush3.bf16.msra.mxu0 %v2488_v11  ;;  %2503 = vmatpush3.bf16.msra.mxu1 %v2500_v10  ;;  %v2728_v18 = vpop.permute.xlu1 %2727  ;;  %v1502_v21 = vpop.permute.xlu0 %1501 }
  0xe6   : > { %2493 = vmatprep.subr.bf16.mxu0 %v2492_v9  ;;  %2505 = vmatprep.subr.bf16.mxu1 %v2504_v6  ;;  %v2730_v28 = vunpack.i.h.bf16 %v2728_v18  ;;  %v2729_v29 = vunpack.i.l.bf16 %v2728_v18 }
  0xe7   : > { %2290 = vmatprep.mubr.msk.f32.mxu0 %vm210_vm0, %v2817_v3  ;;  %2307 = vmatprep.mubr.msk.f32.mxu1 %vm210_vm0, %v2817_v3 }
  0xe8   : > { %v2524_v34 = vpack.c.bf16 %v2730_v28, %v2931_v23  ;;  %v2512_v35 = vpack.c.bf16 %v2729_v29, %v2928_v22 }
  0xe9   : > { %2495 = vmatpush3.bf16.msra.mxu0 %v2492_v9  ;;  %2507 = vmatpush3.bf16.msra.mxu1 %v2504_v6  ;;  %v2738_v26 = vpop.permute.xlu1 %2737  ;;  %v2733_v27 = vpop.permute.xlu0 %2732 }
  0xea   : > { %2497 = vmatprep.subr.bf16.mxu0 %v2496_v25  ;;  %2509 = vmatprep.subr.bf16.mxu1 %v2508_v24  ;;  %v2740_v30 = vunpack.i.h.bf16 %v2738_v26  ;;  %v2739_v31 = vunpack.i.l.bf16 %v2738_v26  ;;  %v2735_v32 = vunpack.i.h.bf16 %v2733_v27  ;;  %v2734_v33 = vunpack.i.l.bf16 %v2733_v27 }
  0xec   : > { %v2528_v36 = vpack.c.bf16 %v2740_v30, %v2735_v32  ;;  %v2516_v37 = vpack.c.bf16 %v2739_v31, %v2734_v33 }
  0xed   : > { %2499 = vmatpush3.bf16.msra.mxu0 %v2496_v25  ;;  %2511 = vmatpush3.bf16.msra.mxu1 %v2508_v24  ;;  %v2748_v14 = vpop.permute.xlu1 %2747  ;;  %v2743_v13 = vpop.permute.xlu0 %2742 }
  0xee   : > { %2288 = vmatprep.subr.mxu0 %v1403_v5  ;;  %2305 = vmatprep.subr.mxu1 %v1502_v21  ;;  %v2750_v7 = vunpack.i.h.bf16 %v2748_v14  ;;  %v2749_v8 = vunpack.i.l.bf16 %v2748_v14  ;;  %v2745_v38 = vunpack.i.h.bf16 %v2743_v13  ;;  %v2744_v39 = vunpack.i.l.bf16 %v2743_v13 }
  0xf0   : > { %v2532_v23 = vpack.c.bf16 %v2750_v7, %v2745_v38  ;;  %v2520_v22 = vpack.c.bf16 %v2749_v8, %v2744_v39 }
  0xf1   : > { %2289 = vmatpush3.msra.mxu0 %v1403_v5  ;;  %2306 = vmatpush3.msra.mxu1 %v1502_v21  ;;  %v1700_v40 = vpop.permute.xlu1 %1699  ;;  %v1601_v41 = vpop.permute.xlu0 %1600 }
  0xf2   : > { %2291 = vmatmul.mubr.msk.f32.vlgmr.msra.gmra.mrb[12].mxu0 %vm210_vm0, %v2962_v58  ;;  %2308 = vmatmul.mubr.msk.f32.vlgmr.msra.gmra.mrb[12].mxu1 %vm210_vm0, %v2962_v58 }
  0xf3   : > { %2513 = vmatprep.subr.bf16.mxu0 %v2512_v35  ;;  %2525 = vmatprep.subr.bf16.mxu1 %v2524_v34 }
  0xf4   : > { %2515 = vmatpush3.bf16.msra.mxu0 %v2512_v35  ;;  %2527 = vmatpush3.bf16.msra.mxu1 %v2524_v34 }
  0xf5   : > { %2517 = vmatprep.subr.bf16.mxu0 %v2516_v37  ;;  %2529 = vmatprep.subr.bf16.mxu1 %v2528_v36 }
  0xf6   : > { %2324 = vmatprep.mubr.msk.f32.mxu0 %vm210_vm0, %v2817_v3  ;;  %2341 = vmatprep.mubr.msk.f32.mxu1 %vm210_vm0, %v2817_v3 }
  0xf8   : > { %2519 = vmatpush3.bf16.msra.mxu0 %v2516_v37  ;;  %2531 = vmatpush3.bf16.msra.mxu1 %v2528_v36 }
  0xf9   : > { %2521 = vmatprep.subr.bf16.mxu0 %v2520_v22  ;;  %2533 = vmatprep.subr.bf16.mxu1 %v2532_v23 }
  0xfc   : > { %2523 = vmatpush3.bf16.msra.mxu0 %v2520_v22  ;;  %2535 = vmatpush3.bf16.msra.mxu1 %v2532_v23 }
  0xfd   : > { %2322 = vmatprep.subr.mxu0 %v1601_v41  ;;  %2339 = vmatprep.subr.mxu1 %v1700_v40 }
 0x100   : > { %2323 = vmatpush3.msra.mxu0 %v1601_v41  ;;  %2340 = vmatpush3.msra.mxu1 %v1700_v40 }
 0x101   : > { %2325 = vmatmul.mubr.msk.f32.vlgmr.msra.gmra.mrb[14].mxu0 %vm210_vm0, %v2962_v58  ;;  %2342 = vmatmul.mubr.msk.f32.vlgmr.msra.gmra.mrb[14].mxu1 %vm210_vm0, %v2962_v58 }
 0x102   : > { %v3037_v3 = vpop.permute.xlu1 %207  ;;  %v3039_v42 = vpop.permute.xlu0 %202 }
 0x16b   : > { %v2088_v43 = vpop.f32.mrb[0].mxu0  ;;  %v2105_v44 = vpop.f32.mrb[0].mxu1 }
 0x16c   : > { %v289_v45 = vadd.f32 %v2088_v43, %v3037_v3  ;;  %v388_v58 = vadd.f32 %v2105_v44, %v3037_v3  ;;  %v283_v46 = vpop.f32.mrb[1].mxu0  ;;  %v382_v47 = vpop.f32.mrb[1].mxu1 }
 0x16d   : > { %v284_v48 = vadd.f32 %v283_v46, %v3039_v42  ;;  %v383_v49 = vadd.f32 %v382_v47, %v3039_v42 }
 0x16e   : > { %294 = vst.msk [vmem:[%s3044_s9 + $0x8] sm:$0xff] %vm292_vm1, %v289_v45  ;;  %1854 = vst.msk [vmem:[%s3044_s9 + $0x18] sm:$0xff] %vm292_vm1, %v388_v58 }
 0x16f   : > { %293 = vst.msk [vmem:[%s3044_s9] sm:$0xff] %vm292_vm1, %v284_v48  ;;  %1853 = vst.msk [vmem:[%s3044_s9 + $0x10] sm:$0xff] %vm292_vm1, %v383_v49 }
 0x17a   : > { %v2122_v50 = vpop.f32.mrb[2].mxu0  ;;  %v2139_v51 = vpop.f32.mrb[2].mxu1 }
 0x17b   : > { %v487_v52 = vadd.f32 %v2122_v50, %v3037_v3  ;;  %v586_v53 = vadd.f32 %v2139_v51, %v3037_v3  ;;  %v481_v17 = vpop.f32.mrb[3].mxu0  ;;  %v580_v16 = vpop.f32.mrb[3].mxu1 }
 0x17c   : > { %v482_v54 = vadd.f32 %v481_v17, %v3039_v42  ;;  %v581_v55 = vadd.f32 %v580_v16, %v3039_v42 }
 0x17d   : > { %1859 = vst.msk [vmem:[%s3044_s9 + $0x28] sm:$0xff] %vm292_vm1, %v487_v52  ;;  %1864 = vst.msk [vmem:[%s3044_s9 + $0x38] sm:$0xff] %vm292_vm1, %v586_v53 }
 0x17e   : > { %1858 = vst.msk [vmem:[%s3044_s9 + $0x20] sm:$0xff] %vm292_vm1, %v482_v54  ;;  %1863 = vst.msk [vmem:[%s3044_s9 + $0x30] sm:$0xff] %vm292_vm1, %v581_v55 }
 0x189   : > { %v2156_v56 = vpop.f32.mrb[4].mxu0  ;;  %v2173_v57 = vpop.f32.mrb[4].mxu1 }
 0x18a   : > { %v685_v59 = vadd.f32 %v2156_v56, %v3037_v3  ;;  %v784_v60 = vadd.f32 %v2173_v57, %v3037_v3  ;;  %v679_v61 = vpop.f32.mrb[5].mxu0  ;;  %v778_v62 = vpop.f32.mrb[5].mxu1 }
 0x18b   : > { %v680_v63 = vadd.f32 %v679_v61, %v3039_v42  ;;  %v779_v0 = vadd.f32 %v778_v62, %v3039_v42 }
 0x18c   : > { %1869 = vst.msk [vmem:[%s3044_s9 + $0x48] sm:$0xff] %vm292_vm1, %v685_v59  ;;  %1874 = vst.msk [vmem:[%s3044_s9 + $0x58] sm:$0xff] %vm292_vm1, %v784_v60 }
 0x18d   : > { %1868 = vst.msk [vmem:[%s3044_s9 + $0x40] sm:$0xff] %vm292_vm1, %v680_v63  ;;  %1873 = vst.msk [vmem:[%s3044_s9 + $0x50] sm:$0xff] %vm292_vm1, %v779_v0 }
 0x198   : > { %v2190_v10 = vpop.f32.mrb[6].mxu0  ;;  %v2207_v11 = vpop.f32.mrb[6].mxu1 }
 0x199   : > { %v883_v1 = vadd.f32 %v2190_v10, %v3037_v3  ;;  %v982_v2 = vadd.f32 %v2207_v11, %v3037_v3  ;;  %v877_v4 = vpop.f32.mrb[7].mxu0  ;;  %v976_v5 = vpop.f32.mrb[7].mxu1 }
 0x19a   : > { %v878_v6 = vadd.f32 %v877_v4, %v3039_v42  ;;  %v977_v9 = vadd.f32 %v976_v5, %v3039_v42 }
 0x19b   : > { %1879 = vst.msk [vmem:[%s3044_s9 + $0x68] sm:$0xff] %vm292_vm1, %v883_v1  ;;  %1884 = vst.msk [vmem:[%s3044_s9 + $0x78] sm:$0xff] %vm292_vm1, %v982_v2 }
 0x19c   : > { %1878 = vst.msk [vmem:[%s3044_s9 + $0x60] sm:$0xff] %vm292_vm1, %v878_v6  ;;  %1883 = vst.msk [vmem:[%s3044_s9 + $0x70] sm:$0xff] %vm292_vm1, %v977_v9 }
 0x1a7   : > { %v2224_v12 = vpop.f32.mrb[8].mxu0  ;;  %v2241_v15 = vpop.f32.mrb[8].mxu1 }
 0x1a8   : > { %v1081_v20 = vadd.f32 %v2224_v12, %v3037_v3  ;;  %v1180_v19 = vadd.f32 %v2241_v15, %v3037_v3  ;;  %v1075_v18 = vpop.f32.mrb[9].mxu0  ;;  %v1174_v21 = vpop.f32.mrb[9].mxu1 }
 0x1a9   : > { %v1076_v24 = vadd.f32 %v1075_v18, %v3039_v42  ;;  %v1175_v25 = vadd.f32 %v1174_v21, %v3039_v42 }
 0x1aa   : > { %1889 = vst.msk [vmem:[%s3044_s9 + $0x88] sm:$0xff] %vm292_vm1, %v1081_v20  ;;  %1894 = vst.msk [vmem:[%s3044_s9 + $0x98] sm:$0xff] %vm292_vm1, %v1180_v19 }
 0x1ab   : > { %1888 = vst.msk [vmem:[%s3044_s9 + $0x80] sm:$0xff] %vm292_vm1, %v1076_v24  ;;  %1893 = vst.msk [vmem:[%s3044_s9 + $0x90] sm:$0xff] %vm292_vm1, %v1175_v25 }
 0x1b6   : > { %v2258_v26 = vpop.f32.mrb[10].mxu0  ;;  %v2275_v27 = vpop.f32.mrb[10].mxu1 }
 0x1b7   : > { %v1279_v28 = vadd.f32 %v2258_v26, %v3037_v3  ;;  %v1378_v29 = vadd.f32 %v2275_v27, %v3037_v3  ;;  %v1273_v30 = vpop.f32.mrb[11].mxu0  ;;  %v1372_v31 = vpop.f32.mrb[11].mxu1 }
 0x1b8   : > { %v1274_v32 = vadd.f32 %v1273_v30, %v3039_v42  ;;  %v1373_v33 = vadd.f32 %v1372_v31, %v3039_v42 }
 0x1b9   : > { %1899 = vst.msk [vmem:[%s3044_s9 + $0xa8] sm:$0xff] %vm292_vm1, %v1279_v28  ;;  %1904 = vst.msk [vmem:[%s3044_s9 + $0xb8] sm:$0xff] %vm292_vm1, %v1378_v29 }
 0x1ba   : > { %1898 = vst.msk [vmem:[%s3044_s9 + $0xa0] sm:$0xff] %vm292_vm1, %v1274_v32  ;;  %1903 = vst.msk [vmem:[%s3044_s9 + $0xb0] sm:$0xff] %vm292_vm1, %v1373_v33 }
 0x1c5   : > { %v2292_v14 = vpop.f32.mrb[12].mxu0  ;;  %v2309_v13 = vpop.f32.mrb[12].mxu1 }
 0x1c6   : > { %v1477_v34 = vadd.f32 %v2292_v14, %v3037_v3  ;;  %v1576_v35 = vadd.f32 %v2309_v13, %v3037_v3  ;;  %v1471_v36 = vpop.f32.mrb[13].mxu0  ;;  %v1570_v37 = vpop.f32.mrb[13].mxu1 }
 0x1c7   : > { %v1472_v7 = vadd.f32 %v1471_v36, %v3039_v42  ;;  %v1571_v8 = vadd.f32 %v1570_v37, %v3039_v42 }
 0x1c8   : > { %1909 = vst.msk [vmem:[%s3044_s9 + $0xc8] sm:$0xff] %vm292_vm1, %v1477_v34  ;;  %1914 = vst.msk [vmem:[%s3044_s9 + $0xd8] sm:$0xff] %vm292_vm1, %v1576_v35 }
 0x1c9   : > { %1908 = vst.msk [vmem:[%s3044_s9 + $0xc0] sm:$0xff] %vm292_vm1, %v1472_v7  ;;  %1913 = vst.msk [vmem:[%s3044_s9 + $0xd0] sm:$0xff] %vm292_vm1, %v1571_v8 }
 0x1d4   : > { %v2326_v38 = vpop.f32.mrb[14].mxu0  ;;  %v2343_v39 = vpop.f32.mrb[14].mxu1 }
 0x1d5   : > { %v1675_v23 = vadd.f32 %v2326_v38, %v3037_v3  ;;  %v1774_v22 = vadd.f32 %v2343_v39, %v3037_v3  ;;  %v1669_v40 = vpop.f32.mrb[15].mxu0  ;;  %v1768_v41 = vpop.f32.mrb[15].mxu1 }
 0x1d6   : > { %v1670_v43 = vadd.f32 %v1669_v40, %v3039_v42  ;;  %v1769_v44 = vadd.f32 %v1768_v41, %v3039_v42 }
 0x1d7   : > { %1919 = vst.msk [vmem:[%s3044_s9 + $0xe8] sm:$0xff] %vm292_vm1, %v1675_v23  ;;  %1924 = vst.msk [vmem:[%s3044_s9 + $0xf8] sm:$0xff] %vm292_vm1, %v1774_v22 }
 0x1d8   : > { %1918 = vst.msk [vmem:[%s3044_s9 + $0xe0] sm:$0xff] %vm292_vm1, %v1670_v43  ;;  %1923 = vst.msk [vmem:[%s3044_s9 + $0xf0] sm:$0xff] %vm292_vm1, %v1769_v44 }
 0x1d9 PF: > { %s13_s12 = sadd.s32 1, %s2759_s12  }
 0x1da   : > { %p10_p4 = scmp.ge.s32.totalorder %s13_s12, 5  }
 0x1dc   :  { %12 = sbr.rel (!%p10_p4) target bundleno = 1 (0x1), region = 92 }

</bundles_post_ra>
